<compile_context>
chip_gen: v7x
topology: tpu7x:2x2x1
jax: 0.10.0
libtpu: 0.0.40
codegen_flags: <defaults>
</compile_context>

<pallas_src>
import functools
import math

import jax
import jax.numpy as jnp
from jax.experimental import pallas as pl
from jax.experimental.pallas import tpu as pltpu

EPS = 1e-6


# --------------------------------------------------------------------------- helpers
def _pick_row_tile(n, cap=512):
    """Largest multiple-of-16 divisor of n that is <= cap (16 keeps bf16 blocks legal).
    Falls back to the full dimension (single block, always legal) when none exists."""
    cap = min(cap, n)
    t = cap - cap % 16
    while t >= 16:
        if n % t == 0:
            return t
        t -= 16
    return n


def _nbytes(shape, itemsize):
    return math.prod(shape) * itemsize


def _mosaic_params(parallel, est_bytes):
    # Limit derived from actual block footprint; capped below v7x's 64 MiB physical VMEM
    # so the same setting is valid on v5e / v6e / v7x.
    limit = int(min(max(2 * est_bytes + (4 << 20), 16 << 20), 48 << 20))
    sem = (pltpu.PARALLEL,) if parallel else (pltpu.ARBITRARY,)
    return pltpu.CompilerParams(dimension_semantics=sem, vmem_limit_bytes=limit)


def _row_spec(tile, width):
    return pl.BlockSpec((tile, width), lambda i: (i, 0))


def _full_spec(shape):
    n = len(shape)
    return pl.BlockSpec(shape, lambda *_: (0,) * n)


def _onehot_rows(v):
    """Row-wise one-hot of argmax (first occurrence on ties, matching torch.max)."""
    c = v.shape[-1]
    m = jnp.max(v, axis=-1, keepdims=True)
    iota = jax.lax.broadcasted_iota(jnp.int32, v.shape, 1)
    cand = jnp.where(v == m, iota, c)
    idx = jnp.min(cand, axis=-1, keepdims=True)
    return (iota == idx).astype(jnp.float32)


# --------------------------------------------------------------------------- expmap0
def _expmap0_kernel(x_ref, z0_ref):
    f = x_ref.shape[1]
    x = x_ref[...]
    nrm = jnp.sqrt(jnp.sum(x * x, axis=-1, keepdims=True))
    e = jnp.exp(nrm)                        # no upper clamp (matches reference)
    ei = pl.reciprocal(e)                   # exact: sinh below needs the precision
    cosh = 0.5 * (e + ei)
    sinh = 0.5 * (e - ei)
    # sinh(n)/n with a series branch to avoid catastrophic cancellation at tiny norms
    sinhc = jnp.where(nrm < 1e-4, 1.0 + nrm * nrm * (1.0 / 6.0),
                      sinh / jnp.maximum(nrm, 1e-30))
    z0_ref[:, 0:1] = cosh                   # time component
    z0_ref[:, 1:f + 1] = sinhc * x          # space components
    z0_ref[:, f + 1:f + 2] = jnp.ones_like(cosh)   # ones column -> row degree for free


def lorentz_expmap0(features, tile):
    n, f = features.shape
    est = 2 * (_nbytes((tile, f), 4) + _nbytes((tile, f + 2), 4))
    return pl.pallas_call(
        _expmap0_kernel,
        out_shape=jax.ShapeDtypeStruct((n, f + 2), jnp.float32),
        grid=(n // tile,),
        in_specs=[_row_spec(tile, f)],
        out_specs=_row_spec(tile, f + 2),
        compiler_params=_mosaic_params(True, est),
    )(features)


# --------------------------------------------------------------------------- GCN layers
def _gcn_layer1_kernel(adj_ref, z0_ref, w_ref, b_ref, h_ref):
    i = pl.program_id(0)
    tm = adj_ref.shape[0]
    width = z0_ref.shape[1]                          # feat+2 (time | space | ones)
    a = adj_ref[...]                                 # (tm, N) bf16
    rhs = z0_ref[...].astype(jnp.bfloat16)           # merged RHS: one adjacency sweep
    r0 = pl.multiple_of(i * tm, tm)
    blk = z0_ref[pl.ds(r0, tm), :]                   # self-loop contribution (f32)
    full = jnp.dot(a, rhs, preferred_element_type=jnp.float32) + blk
    inv_deg = pl.reciprocal(full[:, width - 1:width], approx=True)   # rowsum + 1 >= 1
    agg = full[:, :width - 1] * inv_deg              # D^{-1}(A+I) @ [t|s]
    s = jnp.maximum(jnp.dot(agg, w_ref[...], preferred_element_type=jnp.float32)
                    + b_ref[...], 0.0)
    t = jnp.sqrt(1.0 + jnp.sum(s * s, axis=-1, keepdims=True))
    h = s.shape[1]
    h_ref[:, 0:1] = t
    h_ref[:, 1:h + 1] = s
    h_ref[:, h + 1:h + 2] = jnp.ones_like(t)         # ones column for layer 2


def _gcn_layer2_kernel(adj_ref, h_ref, w_ref, b_ref, scale_ref, z_ref):
    i = pl.program_id(0)
    tm = adj_ref.shape[0]
    width = h_ref.shape[1]
    a = adj_ref[...]
    rhs = h_ref[...].astype(jnp.bfloat16)
    r0 = pl.multiple_of(i * tm, tm)
    blk = h_ref[pl.ds(r0, tm), :]
    full = jnp.dot(a, rhs, preferred_element_type=jnp.float32) + blk
    inv_deg = pl.reciprocal(full[:, width - 1:width], approx=True)
    agg = full[:, :width - 1] * inv_deg
    s = jnp.dot(agg, w_ref[...], preferred_element_type=jnp.float32) + b_ref[...]
    t = jnp.sqrt(1.0 + jnp.sum(s * s, axis=-1, keepdims=True))
    # to_poincare -> L2 normalize * learned scale -> from_poincare (scale clamped as in ref)
    p = s / (t + 1.0)
    pn = jnp.maximum(jnp.sqrt(jnp.sum(p * p, axis=-1, keepdims=True)), 1e-8)
    scale = jnp.clip(scale_ref[...], 1e-2, 0.999)    # (1,1) broadcast
    p = (p / pn) * scale
    pp = jnp.sum(p * p, axis=-1, keepdims=True)
    denom = jnp.maximum(1.0 - pp, 1e-8)
    z_ref[:, 0:1] = (1.0 + pp) / denom
    z_ref[:, 1:] = 2.0 * p / denom


def encode(adj_bf, features, params, tile):
    n, f = features.shape
    h1w = params["W1"].shape[1]          # hidden_dim_enc - 1
    e = params["W2"].shape[1]            # embed_dim
    z0 = lorentz_expmap0(features, tile)                         # (n, f+2)

    est1 = (2 * _nbytes((tile, n), 2) + 2 * _nbytes((n, f + 2), 4)
            + _nbytes(params["W1"].shape, 4) + 2 * _nbytes((tile, h1w + 2), 4))
    h1 = pl.pallas_call(
        _gcn_layer1_kernel,
        out_shape=jax.ShapeDtypeStruct((n, h1w + 2), jnp.float32),
        grid=(n // tile,),
        in_specs=[_row_spec(tile, n), _full_spec((n, f + 2)),
                  _full_spec(params["W1"].shape), _full_spec(params["b1"].shape)],
        out_specs=_row_spec(tile, h1w + 2),
        compiler_params=_mosaic_params(True, est1),
    )(adj_bf, z0, params["W1"], params["b1"])

    est2 = (2 * _nbytes((tile, n), 2) + 2 * _nbytes((n, h1w + 2), 4)
            + _nbytes(params["W2"].shape, 4) + 2 * _nbytes((tile, e + 1), 4))
    z = pl.pallas_call(
        _gcn_layer2_kernel,
        out_shape=jax.ShapeDtypeStruct((n, e + 1), jnp.float32),
        grid=(n // tile,),
        in_specs=[_row_spec(tile, n), _full_spec((n, h1w + 2)),
                  _full_spec(params["W2"].shape), _full_spec(params["b2"].shape),
                  _full_spec((1, 1))],
        out_specs=_row_spec(tile, e + 1),
        compiler_params=_mosaic_params(True, est2),
    )(adj_bf, h1, params["W2"], params["b2"], params["scale"])
    return z


# --------------------------------------------------------------------------- level kernels
def _assign_kernel(adj_ref, ze_ref, wh_ref, bh_ref, wa_ref, ba_ref, *out_refs,
                   tau, emit_hard):
    i = pl.program_id(0)
    tm = adj_ref.shape[0]
    width = ze_ref.shape[1]                          # embed+1 | ones
    a = adj_ref[...]
    rhs = ze_ref[...].astype(jnp.bfloat16)
    r0 = pl.multiple_of(i * tm, tm)
    blk = ze_ref[pl.ds(r0, tm), :]
    full = jnp.dot(a, rhs, preferred_element_type=jnp.float32) + blk
    inv_deg = pl.reciprocal(full[:, width - 1:width], approx=True)
    agg = full[:, :width - 1] * inv_deg
    h = jnp.maximum(jnp.dot(agg, wh_ref[...], preferred_element_type=jnp.float32)
                    + bh_ref[...], 0.0)
    logits = (jnp.dot(h, wa_ref[...], preferred_element_type=jnp.float32)
              + ba_ref[...]) * (1.0 / tau)
    logits = logits - jnp.max(logits, axis=-1, keepdims=True)
    ex = jnp.exp(logits)
    ass = ex * pl.reciprocal(jnp.sum(ex, axis=-1, keepdims=True), approx=True)
    out_refs[0][...] = ass
    if emit_hard:                                    # fused argmax one-hot (level 0 only)
        out_refs[1][...] = _onehot_rows(ass)


def level_assign(adj_bf, ze, lp, tau, tile, emit_hard):
    nk = ze.shape[0]
    m = lp["Wa"].shape[1]
    out_shape = [jax.ShapeDtypeStruct((nk, m), jnp.float32)]
    out_specs = [_row_spec(tile, m)]
    if emit_hard:
        out_shape.append(jax.ShapeDtypeStruct((nk, m), jnp.float32))
        out_specs.append(_row_spec(tile, m))
    est = (2 * _nbytes((tile, nk), 2) + 2 * _nbytes(ze.shape, 4)
           + _nbytes(lp["Wh"].shape, 4) + _nbytes(lp["Wa"].shape, 4)
           + 4 * _nbytes((tile, m), 4))
    return pl.pallas_call(
        functools.partial(_assign_kernel, tau=tau, emit_hard=emit_hard),
        out_shape=tuple(out_shape),
        grid=(nk // tile,),
        in_specs=[_row_spec(tile, nk), _full_spec(ze.shape),
                  _full_spec(lp["Wh"].shape), _full_spec(lp["bh"].shape),
                  _full_spec(lp["Wa"].shape), _full_spec(lp["ba"].shape)],
        out_specs=tuple(out_specs),
        compiler_params=_mosaic_params(True, est),
    )(adj_bf, ze, lp["Wh"], lp["bh"], lp["Wa"], lp["ba"])


def _reduce_kernel(adj_ref, asse_ref, ze_ref, zc_ref, adjc_ref):
    i = pl.program_id(0)
    tm = adj_ref.shape[0]
    m = asse_ref.shape[1] - 1
    d = ze_ref.shape[1] - 1

    @pl.when(i == 0)
    def _():
        zc_ref[...] = jnp.zeros_like(zc_ref)
        adjc_ref[...] = jnp.zeros_like(adjc_ref)

    a = adj_ref[...]                                 # (tm, Nk) bf16
    rhs = asse_ref[...].astype(jnp.bfloat16)         # [ass | ones]
    r0 = pl.multiple_of(i * tm, tm)
    asse_blk = asse_ref[pl.ds(r0, tm), :]            # (tm, m+1), f32
    z_blk = ze_ref[pl.ds(r0, tm), :][:, :d]          # (tm, d)
    full = jnp.dot(a, rhs, preferred_element_type=jnp.float32) + asse_blk
    t_blk = full[:, :m]                              # ((A+I) @ ass) row block
    inv_deg = pl.reciprocal(full[:, m:m + 1], approx=True)
    ass_blk = asse_blk[:, :m]
    # coarsened adjacency: ass^T D^{-1} (A+I) ass   (accumulated across row tiles)
    adjc_ref[...] += jax.lax.dot_general(
        ass_blk * inv_deg, t_blk, (((0,), (0,)), ((), ())),
        preferred_element_type=jnp.float32)
    # Lorentz-midpoint numerator: ass^T z
    zc_ref[...] += jax.lax.dot_general(
        ass_blk, z_blk, (((0,), (0,)), ((), ())),
        preferred_element_type=jnp.float32)

    @pl.when(i == pl.num_programs(0) - 1)
    def _():
        # renormalize onto the hyperboloid (reconstruction of the Lorentz centroid)
        sup = zc_ref[...]
        tt = sup[:, 0:1]
        ss = sup[:, 1:]
        inner = -tt * tt + jnp.sum(ss * ss, axis=-1, keepdims=True)
        zc_ref[...] = sup * jax.lax.rsqrt(jnp.maximum(jnp.abs(inner), 1e-8))


def level_reduce(adj_bf, asse, ze, tile):
    nk = ze.shape[0]
    d = ze.shape[1] - 1
    m = asse.shape[1] - 1
    est = (2 * _nbytes((tile, nk), 2) + 2 * _nbytes(asse.shape, 4)
           + _nbytes(ze.shape, 4) + _nbytes((m, d), 4) + _nbytes((m, m), 4))
    return pl.pallas_call(
        _reduce_kernel,
        out_shape=(jax.ShapeDtypeStruct((m, d), jnp.float32),
                   jax.ShapeDtypeStruct((m, m), jnp.float32)),
        grid=(nk // tile,),
        in_specs=[_row_spec(tile, nk), _full_spec(asse.shape), _full_spec(ze.shape)],
        out_specs=(_full_spec((m, d)), _full_spec((m, m))),
        compiler_params=_mosaic_params(False, est),      # accumulators -> arbitrary
    )(adj_bf, asse, ze)


# --------------------------------------------------------------------------- params
def init_params(key, in_features, hidden_dim_enc, hidden_features, embed_dim, max_nums):
    def glorot(k, shape):
        lim = math.sqrt(6.0 / (shape[0] + shape[1]))
        return jax.random.uniform(k, shape, jnp.float32, -lim, lim)

    keys = jax.random.split(key, 2 + 2 * len(max_nums))
    params = {
        "W1": glorot(keys[0], (in_features + 1, hidden_dim_enc - 1)),
        "b1": jnp.zeros((1, hidden_dim_enc - 1), jnp.float32),
        "W2": glorot(keys[1], (hidden_dim_enc, embed_dim)),
        "b2": jnp.zeros((1, embed_dim), jnp.float32),
        "scale": jnp.full((1, 1), 0.999, jnp.float32),   # nn.Parameter([0.999]); clamped in-kernel
        "layers": [],
    }
    d = embed_dim + 1
    ki = 2
    for m in max_nums:
        params["layers"].append({
            "Wh": glorot(keys[ki], (d, hidden_features)),
            "bh": jnp.zeros((1, hidden_features), jnp.float32),
            "Wa": glorot(keys[ki + 1], (hidden_features, m)),
            "ba": jnp.zeros((1, m), jnp.float32),
        })
        ki += 2
    return params


# --------------------------------------------------------------------------- forward
def hyperse_forward(features, adj, params, height, tau, row_tile=None):
    num_nodes = features.shape[0]
    cap = row_tile if row_tile is not None else 512

    adj_bf = adj.astype(jnp.bfloat16)                # the only N^2 operand; streamed in bf16
    tile0 = _pick_row_tile(num_nodes, cap)

    # encoder: expmap0 + 2x Lorentz GCN + Poincare rescale (row-tiled, parallel)
    z = encode(adj_bf, features, params, tile0)

    embeddings = {height: z}
    clu_mat = {}
    hard_top = None
    adj_k = adj_bf
    z_k = z
    for i, lp in enumerate(params["layers"]):
        nk = z_k.shape[0]
        tile = _pick_row_tile(nk, cap)
        ze = jnp.concatenate([z_k, jnp.ones((nk, 1), jnp.float32)], axis=-1)
        outs = level_assign(adj_k, ze, lp, tau, tile, emit_hard=(i == 0))
        ass = outs[0]
        if i == 0:
            hard_top = outs[1]                       # fused one-hot of clu_mat[height]
        asse = jnp.concatenate([ass, jnp.ones((nk, 1), jnp.float32)], axis=-1)
        zc, adjc = level_reduce(adj_k, asse, ze, tile)
        clu_mat[height - i] = ass
        embeddings[height - i - 1] = zc
        z_k = zc
        adj_k = adjc.astype(jnp.bfloat16)

    # root embedding: Lorentz midpoint of the coarsest level (tiny glue, fused by XLA)
    mu = jnp.sum(z_k, axis=0, keepdims=True)
    inner = -mu[:, 0:1] ** 2 + jnp.sum(mu[:, 1:] ** 2, axis=-1, keepdims=True)
    embeddings[0] = mu / jnp.sqrt(jnp.maximum(jnp.abs(inner), 1e-8))
    clu_mat[1] = jnp.ones((z_k.shape[0], 1), jnp.float32)   # coarsest -> root (unused by forward)

    # --- HyperSE.forward proper (assignment-matrix chain) ---
    # ass_mat[height] = eye; eye @ clu == clu and onehot(eye) == eye, so the bootstrap
    # matmul/argmax is elided.  For large graphs return a label vector instead of the
    # dense identity; kept dense here only for structural fidelity at small N.
    ass_mat = {height: jnp.eye(num_nodes, dtype=jnp.float32)}
    if height >= 2 and params["layers"]:
        soft = clu_mat[height]
        ass_mat[height - 1] = hard_top               # fused in the level-0 kernel
        for k in range(height - 2, 0, -1):
            soft = soft @ clu_mat[k + 1]             # small N x m chain: plain XLA
            ass_mat[k] = _onehot_rows(soft)

    return embeddings[height], embeddings, ass_mat


# --------------------------------------------------------------------------- main
if __name__ == "__main__":
    num_nodes, in_features = 48, 8
    hidden_dim_enc, hidden_features, embed_dim = 16, 16, 2
    height, temperature = 3, 0.2

    # decay_rate / max_nums exactly as in LSENet.__init__
    decay_rate = int(math.exp(math.log(num_nodes) / height))
    max_nums = [int(num_nodes / (decay_rate ** i)) for i in range(1, height)]  # [16, 5]

    key = jax.random.PRNGKey(0)
    k_feat, k_adj, k_par = jax.random.split(key, 3)
    features = jax.random.normal(k_feat, (num_nodes, in_features), jnp.float32)
    rand = jax.random.uniform(k_adj, (num_nodes, num_nodes))
    adj = (rand > 0.5).astype(jnp.float32)
    adj = jnp.maximum(adj, adj.T) * (1.0 - jnp.eye(num_nodes, dtype=jnp.float32))

    params = init_params(k_par, in_features, hidden_dim_enc, hidden_features,
                         embed_dim, max_nums)

    fwd = jax.jit(functools.partial(hyperse_forward, height=height, tau=temperature,
                                    row_tile=16))    # 16-row tiles -> 3-step grids at N=48
    out, embeddings, ass_mat = fwd(features, adj, params)
    jax.block_until_ready(out)

    assert out.shape == (num_nodes, embed_dim + 1)
    assert ass_mat[height].shape == (num_nodes, num_nodes)
    assert ass_mat[1].shape == (num_nodes, max_nums[-1])
    assert embeddings[0].shape == (1, embed_dim + 1)
    assert bool(jnp.all(jnp.isfinite(out)))
    print("KERNEL_OK")
</pallas_src>

<mosaic_0001>
module attributes {stable_mosaic.version = 11 : i64} {
  func.func @_gcn_layer1_kernel(%arg0: i32, %arg1: memref<16x48xbf16, #tpu.memory_space<vmem>>, %arg2: memref<48x10xf32, #tpu.memory_space<vmem>>, %arg3: memref<9x15xf32, #tpu.memory_space<vmem>>, %arg4: memref<1x15xf32, #tpu.memory_space<vmem>>, %arg5: memref<16x17xf32, #tpu.memory_space<vmem>>) attributes {dimension_semantics = [#tpu.dimension_semantics<parallel>], iteration_bounds = array<i64: 3>, scalar_prefetch = 0 : i64, scratch_operands = 0 : i64, tpu.core_type = #tpu.core_type<tc>, window_params = [{transform_indices = @transform_0, window_bounds = array<i64: 16, 48>}, {pipeline_mode = #tpu.pipeline_mode<synchronous>, transform_indices = @transform_1, window_bounds = array<i64: 48, 10>}, {pipeline_mode = #tpu.pipeline_mode<synchronous>, transform_indices = @transform_2, window_bounds = array<i64: 9, 15>}, {pipeline_mode = #tpu.pipeline_mode<synchronous>, transform_indices = @transform_3, window_bounds = array<i64: 1, 15>}, {transform_indices = @transform_4, window_bounds = array<i64: 16, 17>}]} {
    %c0 = arith.constant 0 : index
    %c0_0 = arith.constant 0 : index
    %0 = vector.load %arg1[%c0, %c0_0] : memref<16x48xbf16, #tpu.memory_space<vmem>>, vector<16x48xbf16>
    %c0_1 = arith.constant 0 : index
    %c0_2 = arith.constant 0 : index
    %1 = vector.load %arg2[%c0_1, %c0_2] : memref<48x10xf32, #tpu.memory_space<vmem>>, vector<48x10xf32>
    %2 = arith.truncf %1 : vector<48x10xf32> to vector<48x10xbf16>
    %c16_i32 = arith.constant 16 : i32
    %3 = arith.muli %arg0, %c16_i32 : i32
    %4 = tpu.assume_multiple %3, 16 : i32
    %5 = arith.index_cast %4 : i32 to index
    %c0_3 = arith.constant 0 : index
    %6 = vector.load %arg2[%5, %c0_3] : memref<48x10xf32, #tpu.memory_space<vmem>>, vector<16x10xf32>
    %cst = arith.constant dense<0.000000e+00> : vector<16x10xf32>
    %7 = tpu.matmul %0, %2, %cst {dimension_numbers = #tpu.dot_dimension_numbers<[1], [0], [0], [1], [0, 0, 1, 1], [], []>} : vector<16x48xbf16>, vector<48x10xbf16>, vector<16x10xf32> -> vector<16x10xf32>
    %8 = arith.addf %7, %6 : vector<16x10xf32>
    %9 = vector.extract_strided_slice %8 {offsets = [0, 9], sizes = [16, 1], strides = [1, 1]} : vector<16x10xf32> to vector<16x1xf32>
    %10 = tpu.reciprocal %9 {approx = true} : vector<16x1xf32> -> vector<16x1xf32>
    %11 = vector.extract_strided_slice %8 {offsets = [0, 0], sizes = [16, 9], strides = [1, 1]} : vector<16x10xf32> to vector<16x9xf32>
    %12 = vector.broadcast %10 : vector<16x1xf32> to vector<16x9xf32>
    %13 = arith.mulf %11, %12 : vector<16x9xf32>
    %c0_4 = arith.constant 0 : index
    %c0_5 = arith.constant 0 : index
    %14 = vector.load %arg3[%c0_4, %c0_5] : memref<9x15xf32, #tpu.memory_space<vmem>>, vector<9x15xf32>
    %cst_6 = arith.constant dense<0.000000e+00> : vector<16x15xf32>
    %15 = tpu.matmul %13, %14, %cst_6 {dimension_numbers = #tpu.dot_dimension_numbers<[1], [0], [0], [1], [0, 0, 1, 1], [], []>} : vector<16x9xf32>, vector<9x15xf32>, vector<16x15xf32> -> vector<16x15xf32>
    %c0_7 = arith.constant 0 : index
    %c0_8 = arith.constant 0 : index
    %16 = vector.load %arg4[%c0_7, %c0_8] : memref<1x15xf32, #tpu.memory_space<vmem>>, vector<1x15xf32>
    %17 = vector.broadcast %16 : vector<1x15xf32> to vector<16x15xf32>
    %18 = arith.addf %15, %17 : vector<16x15xf32>
    %cst_9 = arith.constant 0.000000e+00 : f32
    %19 = vector.broadcast %cst_9 : f32 to vector<16x15xf32>
    %20 = arith.maximumf %18, %19 : vector<16x15xf32>
    %21 = arith.mulf %20, %20 : vector<16x15xf32>
    %cst_10 = arith.constant dense<0.000000e+00> : vector<16xf32>
    %22 = vector.multi_reduction <add>, %21, %cst_10 [1] : vector<16x15xf32> to vector<16xf32>
    %23 = vector.shape_cast %22 : vector<16xf32> to vector<16x1xf32>
    %cst_11 = arith.constant 1.000000e+00 : f32
    %24 = vector.broadcast %cst_11 : f32 to vector<16x1xf32>
    %25 = arith.addf %24, %23 : vector<16x1xf32>
    %26 = math.sqrt %25 : vector<16x1xf32>
    %c0_12 = arith.constant 0 : index
    %c0_13 = arith.constant 0 : index
    %27 = vector.load %arg5[%c0_12, %c0_13] : memref<16x17xf32, #tpu.memory_space<vmem>>, vector<16x1xf32>
    tpu.vector_store %arg5[%c0_12, %c0_13], %26 {strides = array<i32>} : memref<16x17xf32, #tpu.memory_space<vmem>>, vector<16x1xf32>,
    %c0_14 = arith.constant 0 : index
    %c1 = arith.constant 1 : index
    %28 = vector.load %arg5[%c0_14, %c1] : memref<16x17xf32, #tpu.memory_space<vmem>>, vector<16x15xf32>
    tpu.vector_store %arg5[%c0_14, %c1], %20 {strides = array<i32>} : memref<16x17xf32, #tpu.memory_space<vmem>>, vector<16x15xf32>,
    %cst_15 = arith.constant 1.000000e+00 : f32
    %29 = vector.broadcast %cst_15 : f32 to vector<16x1xf32>
    %c0_16 = arith.constant 0 : index
    %c16 = arith.constant 16 : index
    %30 = vector.load %arg5[%c0_16, %c16] : memref<16x17xf32, #tpu.memory_space<vmem>>, vector<16x1xf32>
    tpu.vector_store %arg5[%c0_16, %c16], %29 {strides = array<i32>} : memref<16x17xf32, #tpu.memory_space<vmem>>, vector<16x1xf32>,
    return
  }
  func.func @transform_0(%arg0: i32) -> (i32, i32) {
    %c0_i32 = arith.constant 0 : i32
    %c0_i32_0 = arith.constant 0 : i32
    return %arg0, %c0_i32 : i32, i32
  }
  func.func @transform_1(%arg0: i32) -> (i32, i32) {
    %c0_i32 = arith.constant 0 : i32
    %c0_i32_0 = arith.constant 0 : i32
    %c0_i32_1 = arith.constant 0 : i32
    return %c0_i32, %c0_i32_0 : i32, i32
  }
  func.func @transform_2(%arg0: i32) -> (i32, i32) {
    %c0_i32 = arith.constant 0 : i32
    %c0_i32_0 = arith.constant 0 : i32
    %c0_i32_1 = arith.constant 0 : i32
    return %c0_i32, %c0_i32_0 : i32, i32
  }
  func.func @transform_3(%arg0: i32) -> (i32, i32) {
    %c0_i32 = arith.constant 0 : i32
    %c0_i32_0 = arith.constant 0 : i32
    %c0_i32_1 = arith.constant 0 : i32
    return %c0_i32, %c0_i32_0 : i32, i32
  }
  func.func @transform_4(%arg0: i32) -> (i32, i32) {
    %c0_i32 = arith.constant 0 : i32
    %c0_i32_0 = arith.constant 0 : i32
    return %arg0, %c0_i32 : i32, i32
  }
}

module attributes {stable_mosaic.version = 11 : i64} {
  func.func @_expmap0_kernel(%arg0: i32, %arg1: memref<16x8xf32, #tpu.memory_space<vmem>>, %arg2: memref<16x10xf32, #tpu.memory_space<vmem>>) attributes {dimension_semantics = [#tpu.dimension_semantics<parallel>], iteration_bounds = array<i64: 3>, scalar_prefetch = 0 : i64, scratch_operands = 0 : i64, tpu.core_type = #tpu.core_type<tc>, window_params = [{transform_indices = @transform_0, window_bounds = array<i64: 16, 8>}, {transform_indices = @transform_1, window_bounds = array<i64: 16, 10>}]} {
    %c0 = arith.constant 0 : index
    %c0_0 = arith.constant 0 : index
    %0 = vector.load %arg1[%c0, %c0_0] : memref<16x8xf32, #tpu.memory_space<vmem>>, vector<16x8xf32>
    %1 = arith.mulf %0, %0 : vector<16x8xf32>
    %cst = arith.constant dense<0.000000e+00> : vector<16xf32>
    %2 = vector.multi_reduction <add>, %1, %cst [1] : vector<16x8xf32> to vector<16xf32>
    %3 = vector.shape_cast %2 : vector<16xf32> to vector<16x1xf32>
    %4 = math.sqrt %3 : vector<16x1xf32>
    %5 = math.exp %4 : vector<16x1xf32>
    %6 = tpu.reciprocal %5 : vector<16x1xf32> -> vector<16x1xf32>
    %7 = arith.addf %5, %6 : vector<16x1xf32>
    %cst_1 = arith.constant 5.000000e-01 : f32
    %8 = vector.broadcast %cst_1 : f32 to vector<16x1xf32>
    %9 = arith.mulf %8, %7 : vector<16x1xf32>
    %10 = arith.subf %5, %6 : vector<16x1xf32>
    %cst_2 = arith.constant 5.000000e-01 : f32
    %11 = vector.broadcast %cst_2 : f32 to vector<16x1xf32>
    %12 = arith.mulf %11, %10 : vector<16x1xf32>
    %cst_3 = arith.constant 9.99999974E-5 : f32
    %13 = vector.broadcast %cst_3 : f32 to vector<16x1xf32>
    %14 = arith.cmpf olt, %4, %13 : vector<16x1xf32>
    %15 = arith.mulf %4, %4 : vector<16x1xf32>
    %cst_4 = arith.constant 0.166666672 : f32
    %16 = vector.broadcast %cst_4 : f32 to vector<16x1xf32>
    %17 = arith.mulf %15, %16 : vector<16x1xf32>
    %cst_5 = arith.constant 1.000000e+00 : f32
    %18 = vector.broadcast %cst_5 : f32 to vector<16x1xf32>
    %19 = arith.addf %18, %17 : vector<16x1xf32>
    %cst_6 = arith.constant 1.000000e-30 : f32
    %20 = vector.broadcast %cst_6 : f32 to vector<16x1xf32>
    %21 = arith.maximumf %4, %20 : vector<16x1xf32>
    %22 = arith.divf %12, %21 : vector<16x1xf32>
    %23 = arith.select %14, %19, %22 : vector<16x1xi1>, vector<16x1xf32>
    %c0_7 = arith.constant 0 : index
    %c0_8 = arith.constant 0 : index
    %24 = vector.load %arg2[%c0_7, %c0_8] : memref<16x10xf32, #tpu.memory_space<vmem>>, vector<16x1xf32>
    tpu.vector_store %arg2[%c0_7, %c0_8], %9 {strides = array<i32>} : memref<16x10xf32, #tpu.memory_space<vmem>>, vector<16x1xf32>,
    %25 = vector.broadcast %23 : vector<16x1xf32> to vector<16x8xf32>
    %26 = arith.mulf %25, %0 : vector<16x8xf32>
    %c0_9 = arith.constant 0 : index
    %c1 = arith.constant 1 : index
    %27 = vector.load %arg2[%c0_9, %c1] : memref<16x10xf32, #tpu.memory_space<vmem>>, vector<16x8xf32>
    tpu.vector_store %arg2[%c0_9, %c1], %26 {strides = array<i32>} : memref<16x10xf32, #tpu.memory_space<vmem>>, vector<16x8xf32>,
    %cst_10 = arith.constant 1.000000e+00 : f32
    %28 = vector.broadcast %cst_10 : f32 to vector<16x1xf32>
    %c0_11 = arith.constant 0 : index
    %c9 = arith.constant 9 : index
    %29 = vector.load %arg2[%c0_11, %c9] : memref<16x10xf32, #tpu.memory_space<vmem>>, vector<16x1xf32>
    tpu.vector_store %arg2[%c0_11, %c9], %28 {strides = array<i32>} : memref<16x10xf32, #tpu.memory_space<vmem>>, vector<16x1xf32>,
    return
  }
  func.func @transform_0(%arg0: i32) -> (i32, i32) {
    %c0_i32 = arith.constant 0 : i32
    %c0_i32_0 = arith.constant 0 : i32
    return %arg0, %c0_i32 : i32, i32
  }
  func.func @transform_1(%arg0: i32) -> (i32, i32) {
    %c0_i32 = arith.constant 0 : i32
    %c0_i32_0 = arith.constant 0 : i32
    return %arg0, %c0_i32 : i32, i32
  }
}

module attributes {stable_mosaic.version = 11 : i64} {
  func.func @_gcn_layer2_kernel(%arg0: i32, %arg1: memref<16x48xbf16, #tpu.memory_space<vmem>>, %arg2: memref<48x17xf32, #tpu.memory_space<vmem>>, %arg3: memref<16x2xf32, #tpu.memory_space<vmem>>, %arg4: memref<1x2xf32, #tpu.memory_space<vmem>>, %arg5: memref<1x1xf32, #tpu.memory_space<vmem>>, %arg6: memref<16x3xf32, #tpu.memory_space<vmem>>) attributes {dimension_semantics = [#tpu.dimension_semantics<parallel>], iteration_bounds = array<i64: 3>, scalar_prefetch = 0 : i64, scratch_operands = 0 : i64, tpu.core_type = #tpu.core_type<tc>, window_params = [{transform_indices = @transform_0, window_bounds = array<i64: 16, 48>}, {pipeline_mode = #tpu.pipeline_mode<synchronous>, transform_indices = @transform_1, window_bounds = array<i64: 48, 17>}, {pipeline_mode = #tpu.pipeline_mode<synchronous>, transform_indices = @transform_2, window_bounds = array<i64: 16, 2>}, {pipeline_mode = #tpu.pipeline_mode<synchronous>, transform_indices = @transform_3, window_bounds = array<i64: 1, 2>}, {pipeline_mode = #tpu.pipeline_mode<synchronous>, transform_indices = @transform_4, window_bounds = array<i64: 1, 1>}, {transform_indices = @transform_5, window_bounds = array<i64: 16, 3>}]} {
    %c0 = arith.constant 0 : index
    %c0_0 = arith.constant 0 : index
    %0 = vector.load %arg1[%c0, %c0_0] : memref<16x48xbf16, #tpu.memory_space<vmem>>, vector<16x48xbf16>
    %c0_1 = arith.constant 0 : index
    %c0_2 = arith.constant 0 : index
    %1 = vector.load %arg2[%c0_1, %c0_2] : memref<48x17xf32, #tpu.memory_space<vmem>>, vector<48x17xf32>
    %2 = arith.truncf %1 : vector<48x17xf32> to vector<48x17xbf16>
    %c16_i32 = arith.constant 16 : i32
    %3 = arith.muli %arg0, %c16_i32 : i32
    %4 = tpu.assume_multiple %3, 16 : i32
    %5 = arith.index_cast %4 : i32 to index
    %c0_3 = arith.constant 0 : index
    %6 = vector.load %arg2[%5, %c0_3] : memref<48x17xf32, #tpu.memory_space<vmem>>, vector<16x17xf32>
    %cst = arith.constant dense<0.000000e+00> : vector<16x17xf32>
    %7 = tpu.matmul %0, %2, %cst {dimension_numbers = #tpu.dot_dimension_numbers<[1], [0], [0], [1], [0, 0, 1, 1], [], []>} : vector<16x48xbf16>, vector<48x17xbf16>, vector<16x17xf32> -> vector<16x17xf32>
    %8 = arith.addf %7, %6 : vector<16x17xf32>
    %9 = vector.extract_strided_slice %8 {offsets = [0, 16], sizes = [16, 1], strides = [1, 1]} : vector<16x17xf32> to vector<16x1xf32>
    %10 = tpu.reciprocal %9 {approx = true} : vector<16x1xf32> -> vector<16x1xf32>
    %11 = vector.extract_strided_slice %8 {offsets = [0, 0], sizes = [16, 16], strides = [1, 1]} : vector<16x17xf32> to vector<16x16xf32>
    %12 = vector.broadcast %10 : vector<16x1xf32> to vector<16x16xf32>
    %13 = arith.mulf %11, %12 : vector<16x16xf32>
    %c0_4 = arith.constant 0 : index
    %c0_5 = arith.constant 0 : index
    %14 = vector.load %arg3[%c0_4, %c0_5] : memref<16x2xf32, #tpu.memory_space<vmem>>, vector<16x2xf32>
    %cst_6 = arith.constant dense<0.000000e+00> : vector<16x2xf32>
    %15 = tpu.matmul %13, %14, %cst_6 {dimension_numbers = #tpu.dot_dimension_numbers<[1], [0], [0], [1], [0, 0, 1, 1], [], []>} : vector<16x16xf32>, vector<16x2xf32>, vector<16x2xf32> -> vector<16x2xf32>
    %c0_7 = arith.constant 0 : index
    %c0_8 = arith.constant 0 : index
    %16 = vector.load %arg4[%c0_7, %c0_8] : memref<1x2xf32, #tpu.memory_space<vmem>>, vector<1x2xf32>
    %17 = vector.broadcast %16 : vector<1x2xf32> to vector<16x2xf32>
    %18 = arith.addf %15, %17 : vector<16x2xf32>
    %19 = arith.mulf %18, %18 : vector<16x2xf32>
    %cst_9 = arith.constant dense<0.000000e+00> : vector<16xf32>
    %20 = vector.multi_reduction <add>, %19, %cst_9 [1] : vector<16x2xf32> to vector<16xf32>
    %21 = vector.shape_cast %20 : vector<16xf32> to vector<16x1xf32>
    %cst_10 = arith.constant 1.000000e+00 : f32
    %22 = vector.broadcast %cst_10 : f32 to vector<16x1xf32>
    %23 = arith.addf %22, %21 : vector<16x1xf32>
    %24 = math.sqrt %23 : vector<16x1xf32>
    %cst_11 = arith.constant 1.000000e+00 : f32
    %25 = vector.broadcast %cst_11 : f32 to vector<16x1xf32>
    %26 = arith.addf %24, %25 : vector<16x1xf32>
    %27 = vector.broadcast %26 : vector<16x1xf32> to vector<16x2xf32>
    %28 = arith.divf %18, %27 : vector<16x2xf32>
    %29 = arith.mulf %28, %28 : vector<16x2xf32>
    %cst_12 = arith.constant dense<0.000000e+00> : vector<16xf32>
    %30 = vector.multi_reduction <add>, %29, %cst_12 [1] : vector<16x2xf32> to vector<16xf32>
    %31 = vector.shape_cast %30 : vector<16xf32> to vector<16x1xf32>
    %32 = math.sqrt %31 : vector<16x1xf32>
    %cst_13 = arith.constant 9.99999993E-9 : f32
    %33 = vector.broadcast %cst_13 : f32 to vector<16x1xf32>
    %34 = arith.maximumf %32, %33 : vector<16x1xf32>
    %c0_14 = arith.constant 0 : index
    %c0_15 = arith.constant 0 : index
    %35 = vector.load %arg5[%c0_14, %c0_15] : memref<1x1xf32, #tpu.memory_space<vmem>>, vector<1x1xf32>
    %cst_16 = arith.constant 0.00999999977 : f32
    %cst_17 = arith.constant 9.990000e-01 : f32
    %36 = vector.broadcast %cst_16 : f32 to vector<1x1xf32>
    %37 = arith.maximumf %36, %35 : vector<1x1xf32>
    %38 = vector.broadcast %cst_17 : f32 to vector<1x1xf32>
    %39 = arith.minimumf %38, %37 : vector<1x1xf32>
    %40 = vector.broadcast %34 : vector<16x1xf32> to vector<16x2xf32>
    %41 = arith.divf %28, %40 : vector<16x2xf32>
    %42 = vector.broadcast %39 : vector<1x1xf32> to vector<16x2xf32>
    %43 = arith.mulf %41, %42 : vector<16x2xf32>
    %44 = arith.mulf %43, %43 : vector<16x2xf32>
    %cst_18 = arith.constant dense<0.000000e+00> : vector<16xf32>
    %45 = vector.multi_reduction <add>, %44, %cst_18 [1] : vector<16x2xf32> to vector<16xf32>
    %46 = vector.shape_cast %45 : vector<16xf32> to vector<16x1xf32>
    %cst_19 = arith.constant 1.000000e+00 : f32
    %47 = vector.broadcast %cst_19 : f32 to vector<16x1xf32>
    %48 = arith.subf %47, %46 : vector<16x1xf32>
    %cst_20 = arith.constant 9.99999993E-9 : f32
    %49 = vector.broadcast %cst_20 : f32 to vector<16x1xf32>
    %50 = arith.maximumf %48, %49 : vector<16x1xf32>
    %cst_21 = arith.constant 1.000000e+00 : f32
    %51 = vector.broadcast %cst_21 : f32 to vector<16x1xf32>
    %52 = arith.addf %51, %46 : vector<16x1xf32>
    %53 = arith.divf %52, %50 : vector<16x1xf32>
    %c0_22 = arith.constant 0 : index
    %c0_23 = arith.constant 0 : index
    %54 = vector.load %arg6[%c0_22, %c0_23] : memref<16x3xf32, #tpu.memory_space<vmem>>, vector<16x1xf32>
    tpu.vector_store %arg6[%c0_22, %c0_23], %53 {strides = array<i32>} : memref<16x3xf32, #tpu.memory_space<vmem>>, vector<16x1xf32>,
    %cst_24 = arith.constant 2.000000e+00 : f32
    %55 = vector.broadcast %cst_24 : f32 to vector<16x2xf32>
    %56 = arith.mulf %55, %43 : vector<16x2xf32>
    %57 = vector.broadcast %50 : vector<16x1xf32> to vector<16x2xf32>
    %58 = arith.divf %56, %57 : vector<16x2xf32>
    %c0_25 = arith.constant 0 : index
    %c1 = arith.constant 1 : index
    %59 = vector.load %arg6[%c0_25, %c1] : memref<16x3xf32, #tpu.memory_space<vmem>>, vector<16x2xf32>
    tpu.vector_store %arg6[%c0_25, %c1], %58 {strides = array<i32>} : memref<16x3xf32, #tpu.memory_space<vmem>>, vector<16x2xf32>,
    return
  }
  func.func @transform_0(%arg0: i32) -> (i32, i32) {
    %c0_i32 = arith.constant 0 : i32
    %c0_i32_0 = arith.constant 0 : i32
    return %arg0, %c0_i32 : i32, i32
  }
  func.func @transform_1(%arg0: i32) -> (i32, i32) {
    %c0_i32 = arith.constant 0 : i32
    %c0_i32_0 = arith.constant 0 : i32
    %c0_i32_1 = arith.constant 0 : i32
    return %c0_i32, %c0_i32_0 : i32, i32
  }
  func.func @transform_2(%arg0: i32) -> (i32, i32) {
    %c0_i32 = arith.constant 0 : i32
    %c0_i32_0 = arith.constant 0 : i32
    %c0_i32_1 = arith.constant 0 : i32
    return %c0_i32, %c0_i32_0 : i32, i32
  }
  func.func @transform_3(%arg0: i32) -> (i32, i32) {
    %c0_i32 = arith.constant 0 : i32
    %c0_i32_0 = arith.constant 0 : i32
    %c0_i32_1 = arith.constant 0 : i32
    return %c0_i32, %c0_i32_0 : i32, i32
  }
  func.func @transform_4(%arg0: i32) -> (i32, i32) {
    %c0_i32 = arith.constant 0 : i32
    %c0_i32_0 = arith.constant 0 : i32
    %c0_i32_1 = arith.constant 0 : i32
    return %c0_i32, %c0_i32_0 : i32, i32
  }
  func.func @transform_5(%arg0: i32) -> (i32, i32) {
    %c0_i32 = arith.constant 0 : i32
    %c0_i32_0 = arith.constant 0 : i32
    return %arg0, %c0_i32 : i32, i32
  }
}

module attributes {stable_mosaic.version = 11 : i64} {
  func.func @_reduce_kernel(%arg0: i32, %arg1: memref<16x48xbf16, #tpu.memory_space<vmem>>, %arg2: memref<48x17xf32, #tpu.memory_space<vmem>>, %arg3: memref<48x4xf32, #tpu.memory_space<vmem>>, %arg4: memref<16x3xf32, #tpu.memory_space<vmem>>, %arg5: memref<16x16xf32, #tpu.memory_space<vmem>>) attributes {dimension_semantics = [#tpu.dimension_semantics<arbitrary>], iteration_bounds = array<i64: 3>, scalar_prefetch = 0 : i64, scratch_operands = 0 : i64, tpu.core_type = #tpu.core_type<tc>, window_params = [{transform_indices = @transform_0, window_bounds = array<i64: 16, 48>}, {pipeline_mode = #tpu.pipeline_mode<synchronous>, transform_indices = @transform_1, window_bounds = array<i64: 48, 17>}, {pipeline_mode = #tpu.pipeline_mode<synchronous>, transform_indices = @transform_2, window_bounds = array<i64: 48, 4>}, {pipeline_mode = #tpu.pipeline_mode<synchronous>, transform_indices = @transform_3, window_bounds = array<i64: 16, 3>}, {pipeline_mode = #tpu.pipeline_mode<synchronous>, transform_indices = @transform_4, window_bounds = array<i64: 16, 16>}]} {
    %c0_i32 = arith.constant 0 : i32
    %0 = arith.cmpi eq, %arg0, %c0_i32 : i32
    %1 = arith.extui %0 : i1 to i32
    %c0_i32_0 = arith.constant 0 : i32
    %2 = arith.cmpi ne, %1, %c0_i32_0 : i32
    scf.if %2 {
      %cst_17 = arith.constant 0.000000e+00 : f32
      %32 = vector.broadcast %cst_17 : f32 to vector<16x3xf32>
      %c0_18 = arith.constant 0 : index
      %c0_19 = arith.constant 0 : index
      %33 = vector.load %arg4[%c0_18, %c0_19] : memref<16x3xf32, #tpu.memory_space<vmem>>, vector<16x3xf32>
      tpu.vector_store %arg4[%c0_18, %c0_19], %32 {strides = array<i32>} : memref<16x3xf32, #tpu.memory_space<vmem>>, vector<16x3xf32>,
      %cst_20 = arith.constant 0.000000e+00 : f32
      %34 = vector.broadcast %cst_20 : f32 to vector<16x16xf32>
      %c0_21 = arith.constant 0 : index
      %c0_22 = arith.constant 0 : index
      %35 = vector.load %arg5[%c0_21, %c0_22] : memref<16x16xf32, #tpu.memory_space<vmem>>, vector<16x16xf32>
      tpu.vector_store %arg5[%c0_21, %c0_22], %34 {strides = array<i32>} : memref<16x16xf32, #tpu.memory_space<vmem>>, vector<16x16xf32>,
    } else {
    }
    %c0 = arith.constant 0 : index
    %c0_1 = arith.constant 0 : index
    %3 = vector.load %arg1[%c0, %c0_1] : memref<16x48xbf16, #tpu.memory_space<vmem>>, vector<16x48xbf16>
    %c0_2 = arith.constant 0 : index
    %c0_3 = arith.constant 0 : index
    %4 = vector.load %arg2[%c0_2, %c0_3] : memref<48x17xf32, #tpu.memory_space<vmem>>, vector<48x17xf32>
    %5 = arith.truncf %4 : vector<48x17xf32> to vector<48x17xbf16>
    %c16_i32 = arith.constant 16 : i32
    %6 = arith.muli %arg0, %c16_i32 : i32
    %7 = tpu.assume_multiple %6, 16 : i32
    %8 = arith.index_cast %7 : i32 to index
    %c0_4 = arith.constant 0 : index
    %9 = vector.load %arg2[%8, %c0_4] : memref<48x17xf32, #tpu.memory_space<vmem>>, vector<16x17xf32>
    %10 = arith.index_cast %7 : i32 to index
    %c0_5 = arith.constant 0 : index
    %11 = vector.load %arg3[%10, %c0_5] : memref<48x4xf32, #tpu.memory_space<vmem>>, vector<16x4xf32>
    %12 = vector.extract_strided_slice %11 {offsets = [0, 0], sizes = [16, 3], strides = [1, 1]} : vector<16x4xf32> to vector<16x3xf32>
    %cst = arith.constant dense<0.000000e+00> : vector<16x17xf32>
    %13 = tpu.matmul %3, %5, %cst {dimension_numbers = #tpu.dot_dimension_numbers<[1], [0], [0], [1], [0, 0, 1, 1], [], []>} : vector<16x48xbf16>, vector<48x17xbf16>, vector<16x17xf32> -> vector<16x17xf32>
    %14 = arith.addf %13, %9 : vector<16x17xf32>
    %15 = vector.extract_strided_slice %14 {offsets = [0, 0], sizes = [16, 16], strides = [1, 1]} : vector<16x17xf32> to vector<16x16xf32>
    %16 = vector.extract_strided_slice %14 {offsets = [0, 16], sizes = [16, 1], strides = [1, 1]} : vector<16x17xf32> to vector<16x1xf32>
    %17 = tpu.reciprocal %16 {approx = true} : vector<16x1xf32> -> vector<16x1xf32>
    %18 = vector.extract_strided_slice %9 {offsets = [0, 0], sizes = [16, 16], strides = [1, 1]} : vector<16x17xf32> to vector<16x16xf32>
    %c0_6 = arith.constant 0 : index
    %c0_7 = arith.constant 0 : index
    %19 = vector.load %arg5[%c0_6, %c0_7] : memref<16x16xf32, #tpu.memory_space<vmem>>, vector<16x16xf32>
    %20 = vector.broadcast %17 : vector<16x1xf32> to vector<16x16xf32>
    %21 = arith.mulf %18, %20 : vector<16x16xf32>
    %cst_8 = arith.constant dense<0.000000e+00> : vector<16x16xf32>
    %22 = tpu.matmul %21, %15, %cst_8 {dimension_numbers = #tpu.dot_dimension_numbers<[0], [0], [1], [1], [0, 1, 1, 1], [], []>} : vector<16x16xf32>, vector<16x16xf32>, vector<16x16xf32> -> vector<16x16xf32>
    %23 = arith.addf %19, %22 : vector<16x16xf32>
    %c0_9 = arith.constant 0 : index
    %c0_10 = arith.constant 0 : index
    %24 = vector.load %arg5[%c0_9, %c0_10] : memref<16x16xf32, #tpu.memory_space<vmem>>, vector<16x16xf32>
    tpu.vector_store %arg5[%c0_9, %c0_10], %23 {strides = array<i32>} : memref<16x16xf32, #tpu.memory_space<vmem>>, vector<16x16xf32>,
    %c0_11 = arith.constant 0 : index
    %c0_12 = arith.constant 0 : index
    %25 = vector.load %arg4[%c0_11, %c0_12] : memref<16x3xf32, #tpu.memory_space<vmem>>, vector<16x3xf32>
    %cst_13 = arith.constant dense<0.000000e+00> : vector<16x3xf32>
    %26 = tpu.matmul %18, %12, %cst_13 {dimension_numbers = #tpu.dot_dimension_numbers<[0], [0], [1], [1], [0, 1, 1, 1], [], []>} : vector<16x16xf32>, vector<16x3xf32>, vector<16x3xf32> -> vector<16x3xf32>
    %27 = arith.addf %25, %26 : vector<16x3xf32>
    %c0_14 = arith.constant 0 : index
    %c0_15 = arith.constant 0 : index
    %28 = vector.load %arg4[%c0_14, %c0_15] : memref<16x3xf32, #tpu.memory_space<vmem>>, vector<16x3xf32>
    tpu.vector_store %arg4[%c0_14, %c0_15], %27 {strides = array<i32>} : memref<16x3xf32, #tpu.memory_space<vmem>>, vector<16x3xf32>,
    %c2_i32 = arith.constant 2 : i32
    %29 = arith.cmpi eq, %arg0, %c2_i32 : i32
    %30 = arith.extui %29 : i1 to i32
    %c0_i32_16 = arith.constant 0 : i32
    %31 = arith.cmpi ne, %30, %c0_i32_16 : i32
    scf.if %31 {
      %c0_17 = arith.constant 0 : index
      %c0_18 = arith.constant 0 : index
      %32 = vector.load %arg4[%c0_17, %c0_18] : memref<16x3xf32, #tpu.memory_space<vmem>>, vector<16x3xf32>
      %33 = vector.extract_strided_slice %32 {offsets = [0, 0], sizes = [16, 1], strides = [1, 1]} : vector<16x3xf32> to vector<16x1xf32>
      %34 = vector.extract_strided_slice %32 {offsets = [0, 1], sizes = [16, 2], strides = [1, 1]} : vector<16x3xf32> to vector<16x2xf32>
      %cst_19 = arith.constant 0.000000e+00 : f32
      %35 = vector.broadcast %cst_19 : f32 to vector<16x1xf32>
      %36 = arith.subf %35, %33 : vector<16x1xf32>
      %37 = arith.mulf %36, %33 : vector<16x1xf32>
      %38 = arith.mulf %34, %34 : vector<16x2xf32>
      %cst_20 = arith.constant dense<0.000000e+00> : vector<16xf32>
      %39 = vector.multi_reduction <add>, %38, %cst_20 [1] : vector<16x2xf32> to vector<16xf32>
      %40 = vector.shape_cast %39 : vector<16xf32> to vector<16x1xf32>
      %41 = arith.addf %37, %40 : vector<16x1xf32>
      %42 = math.absf %41 : vector<16x1xf32>
      %cst_21 = arith.constant 9.99999993E-9 : f32
      %43 = vector.broadcast %cst_21 : f32 to vector<16x1xf32>
      %44 = arith.maximumf %42, %43 : vector<16x1xf32>
      %45 = math.rsqrt %44 : vector<16x1xf32>
      %46 = vector.broadcast %45 : vector<16x1xf32> to vector<16x3xf32>
      %47 = arith.mulf %32, %46 : vector<16x3xf32>
      %c0_22 = arith.constant 0 : index
      %c0_23 = arith.constant 0 : index
      %48 = vector.load %arg4[%c0_22, %c0_23] : memref<16x3xf32, #tpu.memory_space<vmem>>, vector<16x3xf32>
      tpu.vector_store %arg4[%c0_22, %c0_23], %47 {strides = array<i32>} : memref<16x3xf32, #tpu.memory_space<vmem>>, vector<16x3xf32>,
    } else {
    }
    return
  }
  func.func @transform_0(%arg0: i32) -> (i32, i32) {
    %c0_i32 = arith.constant 0 : i32
    %c0_i32_0 = arith.constant 0 : i32
    return %arg0, %c0_i32 : i32, i32
  }
  func.func @transform_1(%arg0: i32) -> (i32, i32) {
    %c0_i32 = arith.constant 0 : i32
    %c0_i32_0 = arith.constant 0 : i32
    %c0_i32_1 = arith.constant 0 : i32
    return %c0_i32, %c0_i32_0 : i32, i32
  }
  func.func @transform_2(%arg0: i32) -> (i32, i32) {
    %c0_i32 = arith.constant 0 : i32
    %c0_i32_0 = arith.constant 0 : i32
    %c0_i32_1 = arith.constant 0 : i32
    return %c0_i32, %c0_i32_0 : i32, i32
  }
  func.func @transform_3(%arg0: i32) -> (i32, i32) {
    %c0_i32 = arith.constant 0 : i32
    %c0_i32_0 = arith.constant 0 : i32
    %c0_i32_1 = arith.constant 0 : i32
    return %c0_i32, %c0_i32_0 : i32, i32
  }
  func.func @transform_4(%arg0: i32) -> (i32, i32) {
    %c0_i32 = arith.constant 0 : i32
    %c0_i32_0 = arith.constant 0 : i32
    %c0_i32_1 = arith.constant 0 : i32
    return %c0_i32, %c0_i32_0 : i32, i32
  }
}

module attributes {stable_mosaic.version = 11 : i64} {
  func.func @_assign_kernel(%arg0: i32, %arg1: memref<16x48xbf16, #tpu.memory_space<vmem>>, %arg2: memref<48x4xf32, #tpu.memory_space<vmem>>, %arg3: memref<3x16xf32, #tpu.memory_space<vmem>>, %arg4: memref<1x16xf32, #tpu.memory_space<vmem>>, %arg5: memref<16x16xf32, #tpu.memory_space<vmem>>, %arg6: memref<1x16xf32, #tpu.memory_space<vmem>>, %arg7: memref<16x16xf32, #tpu.memory_space<vmem>>, %arg8: memref<16x16xf32, #tpu.memory_space<vmem>>) attributes {dimension_semantics = [#tpu.dimension_semantics<parallel>], iteration_bounds = array<i64: 3>, scalar_prefetch = 0 : i64, scratch_operands = 0 : i64, tpu.core_type = #tpu.core_type<tc>, window_params = [{transform_indices = @transform_0, window_bounds = array<i64: 16, 48>}, {pipeline_mode = #tpu.pipeline_mode<synchronous>, transform_indices = @transform_1, window_bounds = array<i64: 48, 4>}, {pipeline_mode = #tpu.pipeline_mode<synchronous>, transform_indices = @transform_2, window_bounds = array<i64: 3, 16>}, {pipeline_mode = #tpu.pipeline_mode<synchronous>, transform_indices = @transform_3, window_bounds = array<i64: 1, 16>}, {pipeline_mode = #tpu.pipeline_mode<synchronous>, transform_indices = @transform_4, window_bounds = array<i64: 16, 16>}, {pipeline_mode = #tpu.pipeline_mode<synchronous>, transform_indices = @transform_5, window_bounds = array<i64: 1, 16>}, {transform_indices = @transform_6, window_bounds = array<i64: 16, 16>}, {transform_indices = @transform_7, window_bounds = array<i64: 16, 16>}]} {
    %c0 = arith.constant 0 : index
    %c0_0 = arith.constant 0 : index
    %0 = vector.load %arg1[%c0, %c0_0] : memref<16x48xbf16, #tpu.memory_space<vmem>>, vector<16x48xbf16>
    %c0_1 = arith.constant 0 : index
    %c0_2 = arith.constant 0 : index
    %1 = vector.load %arg2[%c0_1, %c0_2] : memref<48x4xf32, #tpu.memory_space<vmem>>, vector<48x4xf32>
    %2 = arith.truncf %1 : vector<48x4xf32> to vector<48x4xbf16>
    %c16_i32 = arith.constant 16 : i32
    %3 = arith.muli %arg0, %c16_i32 : i32
    %4 = tpu.assume_multiple %3, 16 : i32
    %5 = arith.index_cast %4 : i32 to index
    %c0_3 = arith.constant 0 : index
    %6 = vector.load %arg2[%5, %c0_3] : memref<48x4xf32, #tpu.memory_space<vmem>>, vector<16x4xf32>
    %cst = arith.constant dense<0.000000e+00> : vector<16x4xf32>
    %7 = tpu.matmul %0, %2, %cst {dimension_numbers = #tpu.dot_dimension_numbers<[1], [0], [0], [1], [0, 0, 1, 1], [], []>} : vector<16x48xbf16>, vector<48x4xbf16>, vector<16x4xf32> -> vector<16x4xf32>
    %8 = arith.addf %7, %6 : vector<16x4xf32>
    %9 = vector.extract_strided_slice %8 {offsets = [0, 3], sizes = [16, 1], strides = [1, 1]} : vector<16x4xf32> to vector<16x1xf32>
    %10 = tpu.reciprocal %9 {approx = true} : vector<16x1xf32> -> vector<16x1xf32>
    %11 = vector.extract_strided_slice %8 {offsets = [0, 0], sizes = [16, 3], strides = [1, 1]} : vector<16x4xf32> to vector<16x3xf32>
    %12 = vector.broadcast %10 : vector<16x1xf32> to vector<16x3xf32>
    %13 = arith.mulf %11, %12 : vector<16x3xf32>
    %c0_4 = arith.constant 0 : index
    %c0_5 = arith.constant 0 : index
    %14 = vector.load %arg3[%c0_4, %c0_5] : memref<3x16xf32, #tpu.memory_space<vmem>>, vector<3x16xf32>
    %cst_6 = arith.constant dense<0.000000e+00> : vector<16x16xf32>
    %15 = tpu.matmul %13, %14, %cst_6 {dimension_numbers = #tpu.dot_dimension_numbers<[1], [0], [0], [1], [0, 0, 1, 1], [], []>} : vector<16x3xf32>, vector<3x16xf32>, vector<16x16xf32> -> vector<16x16xf32>
    %c0_7 = arith.constant 0 : index
    %c0_8 = arith.constant 0 : index
    %16 = vector.load %arg4[%c0_7, %c0_8] : memref<1x16xf32, #tpu.memory_space<vmem>>, vector<1x16xf32>
    %17 = vector.broadcast %16 : vector<1x16xf32> to vector<16x16xf32>
    %18 = arith.addf %15, %17 : vector<16x16xf32>
    %cst_9 = arith.constant 0.000000e+00 : f32
    %19 = vector.broadcast %cst_9 : f32 to vector<16x16xf32>
    %20 = arith.maximumf %18, %19 : vector<16x16xf32>
    %c0_10 = arith.constant 0 : index
    %c0_11 = arith.constant 0 : index
    %21 = vector.load %arg5[%c0_10, %c0_11] : memref<16x16xf32, #tpu.memory_space<vmem>>, vector<16x16xf32>
    %cst_12 = arith.constant dense<0.000000e+00> : vector<16x16xf32>
    %22 = tpu.matmul %20, %21, %cst_12 {dimension_numbers = #tpu.dot_dimension_numbers<[1], [0], [0], [1], [0, 0, 1, 1], [], []>} : vector<16x16xf32>, vector<16x16xf32>, vector<16x16xf32> -> vector<16x16xf32>
    %c0_13 = arith.constant 0 : index
    %c0_14 = arith.constant 0 : index
    %23 = vector.load %arg6[%c0_13, %c0_14] : memref<1x16xf32, #tpu.memory_space<vmem>>, vector<1x16xf32>
    %24 = vector.broadcast %23 : vector<1x16xf32> to vector<16x16xf32>
    %25 = arith.addf %22, %24 : vector<16x16xf32>
    %cst_15 = arith.constant 5.000000e+00 : f32
    %26 = vector.broadcast %cst_15 : f32 to vector<16x16xf32>
    %27 = arith.mulf %25, %26 : vector<16x16xf32>
    %cst_16 = arith.constant dense<0xFF800000> : vector<16xf32>
    %28 = vector.multi_reduction <maximumf>, %27, %cst_16 [1] : vector<16x16xf32> to vector<16xf32>
    %29 = vector.shape_cast %28 : vector<16xf32> to vector<16x1xf32>
    %30 = vector.broadcast %29 : vector<16x1xf32> to vector<16x16xf32>
    %31 = arith.subf %27, %30 : vector<16x16xf32>
    %32 = math.exp %31 : vector<16x16xf32>
    %cst_17 = arith.constant dense<0.000000e+00> : vector<16xf32>
    %33 = vector.multi_reduction <add>, %32, %cst_17 [1] : vector<16x16xf32> to vector<16xf32>
    %34 = vector.shape_cast %33 : vector<16xf32> to vector<16x1xf32>
    %35 = tpu.reciprocal %34 {approx = true} : vector<16x1xf32> -> vector<16x1xf32>
    %36 = vector.broadcast %35 : vector<16x1xf32> to vector<16x16xf32>
    %37 = arith.mulf %32, %36 : vector<16x16xf32>
    %c0_18 = arith.constant 0 : index
    %c0_19 = arith.constant 0 : index
    %38 = vector.load %arg7[%c0_18, %c0_19] : memref<16x16xf32, #tpu.memory_space<vmem>>, vector<16x16xf32>
    tpu.vector_store %arg7[%c0_18, %c0_19], %37 {strides = array<i32>} : memref<16x16xf32, #tpu.memory_space<vmem>>, vector<16x16xf32>,
    %cst_20 = arith.constant dense<0xFF800000> : vector<16xf32>
    %39 = vector.multi_reduction <maximumf>, %37, %cst_20 [1] : vector<16x16xf32> to vector<16xf32>
    %40 = vector.shape_cast %39 : vector<16xf32> to vector<16x1xf32>
    %41 = tpu.iota {dimensions = array<i32: 1>} : vector<16x16xi32>
    %42 = vector.broadcast %40 : vector<16x1xf32> to vector<16x16xf32>
    %43 = arith.cmpf oeq, %37, %42 : vector<16x16xf32>
    %c16_i32_21 = arith.constant 16 : i32
    %44 = vector.broadcast %c16_i32_21 : i32 to vector<16x16xi32>
    %45 = arith.select %43, %41, %44 : vector<16x16xi1>, vector<16x16xi32>
    %cst_22 = arith.constant dense<2147483647> : vector<16xi32>
    %46 = vector.multi_reduction <minsi>, %45, %cst_22 [1] : vector<16x16xi32> to vector<16xi32>
    %47 = vector.shape_cast %46 : vector<16xi32> to vector<16x1xi32>
    %48 = vector.broadcast %47 : vector<16x1xi32> to vector<16x16xi32>
    %49 = arith.cmpi eq, %41, %48 : vector<16x16xi32>
    %50 = arith.extui %49 : vector<16x16xi1> to vector<16x16xi32>
    %51 = arith.sitofp %50 : vector<16x16xi32> to vector<16x16xf32>
    %c0_23 = arith.constant 0 : index
    %c0_24 = arith.constant 0 : index
    %52 = vector.load %arg8[%c0_23, %c0_24] : memref<16x16xf32, #tpu.memory_space<vmem>>, vector<16x16xf32>
    tpu.vector_store %arg8[%c0_23, %c0_24], %51 {strides = array<i32>} : memref<16x16xf32, #tpu.memory_space<vmem>>, vector<16x16xf32>,
    return
  }
  func.func @transform_0(%arg0: i32) -> (i32, i32) {
    %c0_i32 = arith.constant 0 : i32
    %c0_i32_0 = arith.constant 0 : i32
    return %arg0, %c0_i32 : i32, i32
  }
  func.func @transform_1(%arg0: i32) -> (i32, i32) {
    %c0_i32 = arith.constant 0 : i32
    %c0_i32_0 = arith.constant 0 : i32
    %c0_i32_1 = arith.constant 0 : i32
    return %c0_i32, %c0_i32_0 : i32, i32
  }
  func.func @transform_2(%arg0: i32) -> (i32, i32) {
    %c0_i32 = arith.constant 0 : i32
    %c0_i32_0 = arith.constant 0 : i32
    %c0_i32_1 = arith.constant 0 : i32
    return %c0_i32, %c0_i32_0 : i32, i32
  }
  func.func @transform_3(%arg0: i32) -> (i32, i32) {
    %c0_i32 = arith.constant 0 : i32
    %c0_i32_0 = arith.constant 0 : i32
    %c0_i32_1 = arith.constant 0 : i32
    return %c0_i32, %c0_i32_0 : i32, i32
  }
  func.func @transform_4(%arg0: i32) -> (i32, i32) {
    %c0_i32 = arith.constant 0 : i32
    %c0_i32_0 = arith.constant 0 : i32
    %c0_i32_1 = arith.constant 0 : i32
    return %c0_i32, %c0_i32_0 : i32, i32
  }
  func.func @transform_5(%arg0: i32) -> (i32, i32) {
    %c0_i32 = arith.constant 0 : i32
    %c0_i32_0 = arith.constant 0 : i32
    %c0_i32_1 = arith.constant 0 : i32
    return %c0_i32, %c0_i32_0 : i32, i32
  }
  func.func @transform_6(%arg0: i32) -> (i32, i32) {
    %c0_i32 = arith.constant 0 : i32
    %c0_i32_0 = arith.constant 0 : i32
    return %arg0, %c0_i32 : i32, i32
  }
  func.func @transform_7(%arg0: i32) -> (i32, i32) {
    %c0_i32 = arith.constant 0 : i32
    %c0_i32_0 = arith.constant 0 : i32
    return %arg0, %c0_i32 : i32, i32
  }
}

module attributes {stable_mosaic.version = 11 : i64} {
  func.func @_assign_kernel(%arg0: i32, %arg1: memref<16x16xbf16, #tpu.memory_space<vmem>>, %arg2: memref<16x4xf32, #tpu.memory_space<vmem>>, %arg3: memref<3x16xf32, #tpu.memory_space<vmem>>, %arg4: memref<1x16xf32, #tpu.memory_space<vmem>>, %arg5: memref<16x5xf32, #tpu.memory_space<vmem>>, %arg6: memref<1x5xf32, #tpu.memory_space<vmem>>, %arg7: memref<16x5xf32, #tpu.memory_space<vmem>>) attributes {dimension_semantics = [#tpu.dimension_semantics<parallel>], iteration_bounds = array<i64: 1>, scalar_prefetch = 0 : i64, scratch_operands = 0 : i64, tpu.core_type = #tpu.core_type<tc>, window_params = [{transform_indices = @transform_0, window_bounds = array<i64: 16, 16>}, {pipeline_mode = #tpu.pipeline_mode<synchronous>, transform_indices = @transform_1, window_bounds = array<i64: 16, 4>}, {pipeline_mode = #tpu.pipeline_mode<synchronous>, transform_indices = @transform_2, window_bounds = array<i64: 3, 16>}, {pipeline_mode = #tpu.pipeline_mode<synchronous>, transform_indices = @transform_3, window_bounds = array<i64: 1, 16>}, {pipeline_mode = #tpu.pipeline_mode<synchronous>, transform_indices = @transform_4, window_bounds = array<i64: 16, 5>}, {pipeline_mode = #tpu.pipeline_mode<synchronous>, transform_indices = @transform_5, window_bounds = array<i64: 1, 5>}, {transform_indices = @transform_6, window_bounds = array<i64: 16, 5>}]} {
    %c0 = arith.constant 0 : index
    %c0_0 = arith.constant 0 : index
    %0 = vector.load %arg1[%c0, %c0_0] : memref<16x16xbf16, #tpu.memory_space<vmem>>, vector<16x16xbf16>
    %c0_1 = arith.constant 0 : index
    %c0_2 = arith.constant 0 : index
    %1 = vector.load %arg2[%c0_1, %c0_2] : memref<16x4xf32, #tpu.memory_space<vmem>>, vector<16x4xf32>
    %2 = arith.truncf %1 : vector<16x4xf32> to vector<16x4xbf16>
    %c16_i32 = arith.constant 16 : i32
    %3 = arith.muli %arg0, %c16_i32 : i32
    %4 = tpu.assume_multiple %3, 16 : i32
    %5 = arith.index_cast %4 : i32 to index
    %c0_3 = arith.constant 0 : index
    %6 = vector.load %arg2[%5, %c0_3] : memref<16x4xf32, #tpu.memory_space<vmem>>, vector<16x4xf32>
    %cst = arith.constant dense<0.000000e+00> : vector<16x4xf32>
    %7 = tpu.matmul %0, %2, %cst {dimension_numbers = #tpu.dot_dimension_numbers<[1], [0], [0], [1], [0, 0, 1, 1], [], []>} : vector<16x16xbf16>, vector<16x4xbf16>, vector<16x4xf32> -> vector<16x4xf32>
    %8 = arith.addf %7, %6 : vector<16x4xf32>
    %9 = vector.extract_strided_slice %8 {offsets = [0, 3], sizes = [16, 1], strides = [1, 1]} : vector<16x4xf32> to vector<16x1xf32>
    %10 = tpu.reciprocal %9 {approx = true} : vector<16x1xf32> -> vector<16x1xf32>
    %11 = vector.extract_strided_slice %8 {offsets = [0, 0], sizes = [16, 3], strides = [1, 1]} : vector<16x4xf32> to vector<16x3xf32>
    %12 = vector.broadcast %10 : vector<16x1xf32> to vector<16x3xf32>
    %13 = arith.mulf %11, %12 : vector<16x3xf32>
    %c0_4 = arith.constant 0 : index
    %c0_5 = arith.constant 0 : index
    %14 = vector.load %arg3[%c0_4, %c0_5] : memref<3x16xf32, #tpu.memory_space<vmem>>, vector<3x16xf32>
    %cst_6 = arith.constant dense<0.000000e+00> : vector<16x16xf32>
    %15 = tpu.matmul %13, %14, %cst_6 {dimension_numbers = #tpu.dot_dimension_numbers<[1], [0], [0], [1], [0, 0, 1, 1], [], []>} : vector<16x3xf32>, vector<3x16xf32>, vector<16x16xf32> -> vector<16x16xf32>
    %c0_7 = arith.constant 0 : index
    %c0_8 = arith.constant 0 : index
    %16 = vector.load %arg4[%c0_7, %c0_8] : memref<1x16xf32, #tpu.memory_space<vmem>>, vector<1x16xf32>
    %17 = vector.broadcast %16 : vector<1x16xf32> to vector<16x16xf32>
    %18 = arith.addf %15, %17 : vector<16x16xf32>
    %cst_9 = arith.constant 0.000000e+00 : f32
    %19 = vector.broadcast %cst_9 : f32 to vector<16x16xf32>
    %20 = arith.maximumf %18, %19 : vector<16x16xf32>
    %c0_10 = arith.constant 0 : index
    %c0_11 = arith.constant 0 : index
    %21 = vector.load %arg5[%c0_10, %c0_11] : memref<16x5xf32, #tpu.memory_space<vmem>>, vector<16x5xf32>
    %cst_12 = arith.constant dense<0.000000e+00> : vector<16x5xf32>
    %22 = tpu.matmul %20, %21, %cst_12 {dimension_numbers = #tpu.dot_dimension_numbers<[1], [0], [0], [1], [0, 0, 1, 1], [], []>} : vector<16x16xf32>, vector<16x5xf32>, vector<16x5xf32> -> vector<16x5xf32>
    %c0_13 = arith.constant 0 : index
    %c0_14 = arith.constant 0 : index
    %23 = vector.load %arg6[%c0_13, %c0_14] : memref<1x5xf32, #tpu.memory_space<vmem>>, vector<1x5xf32>
    %24 = vector.broadcast %23 : vector<1x5xf32> to vector<16x5xf32>
    %25 = arith.addf %22, %24 : vector<16x5xf32>
    %cst_15 = arith.constant 5.000000e+00 : f32
    %26 = vector.broadcast %cst_15 : f32 to vector<16x5xf32>
    %27 = arith.mulf %25, %26 : vector<16x5xf32>
    %cst_16 = arith.constant dense<0xFF800000> : vector<16xf32>
    %28 = vector.multi_reduction <maximumf>, %27, %cst_16 [1] : vector<16x5xf32> to vector<16xf32>
    %29 = vector.shape_cast %28 : vector<16xf32> to vector<16x1xf32>
    %30 = vector.broadcast %29 : vector<16x1xf32> to vector<16x5xf32>
    %31 = arith.subf %27, %30 : vector<16x5xf32>
    %32 = math.exp %31 : vector<16x5xf32>
    %cst_17 = arith.constant dense<0.000000e+00> : vector<16xf32>
    %33 = vector.multi_reduction <add>, %32, %cst_17 [1] : vector<16x5xf32> to vector<16xf32>
    %34 = vector.shape_cast %33 : vector<16xf32> to vector<16x1xf32>
    %35 = tpu.reciprocal %34 {approx = true} : vector<16x1xf32> -> vector<16x1xf32>
    %36 = vector.broadcast %35 : vector<16x1xf32> to vector<16x5xf32>
    %37 = arith.mulf %32, %36 : vector<16x5xf32>
    %c0_18 = arith.constant 0 : index
    %c0_19 = arith.constant 0 : index
    %38 = vector.load %arg7[%c0_18, %c0_19] : memref<16x5xf32, #tpu.memory_space<vmem>>, vector<16x5xf32>
    tpu.vector_store %arg7[%c0_18, %c0_19], %37 {strides = array<i32>} : memref<16x5xf32, #tpu.memory_space<vmem>>, vector<16x5xf32>,
    return
  }
  func.func @transform_0(%arg0: i32) -> (i32, i32) {
    %c0_i32 = arith.constant 0 : i32
    %c0_i32_0 = arith.constant 0 : i32
    return %arg0, %c0_i32 : i32, i32
  }
  func.func @transform_1(%arg0: i32) -> (i32, i32) {
    %c0_i32 = arith.constant 0 : i32
    %c0_i32_0 = arith.constant 0 : i32
    %c0_i32_1 = arith.constant 0 : i32
    return %c0_i32, %c0_i32_0 : i32, i32
  }
  func.func @transform_2(%arg0: i32) -> (i32, i32) {
    %c0_i32 = arith.constant 0 : i32
    %c0_i32_0 = arith.constant 0 : i32
    %c0_i32_1 = arith.constant 0 : i32
    return %c0_i32, %c0_i32_0 : i32, i32
  }
  func.func @transform_3(%arg0: i32) -> (i32, i32) {
    %c0_i32 = arith.constant 0 : i32
    %c0_i32_0 = arith.constant 0 : i32
    %c0_i32_1 = arith.constant 0 : i32
    return %c0_i32, %c0_i32_0 : i32, i32
  }
  func.func @transform_4(%arg0: i32) -> (i32, i32) {
    %c0_i32 = arith.constant 0 : i32
    %c0_i32_0 = arith.constant 0 : i32
    %c0_i32_1 = arith.constant 0 : i32
    return %c0_i32, %c0_i32_0 : i32, i32
  }
  func.func @transform_5(%arg0: i32) -> (i32, i32) {
    %c0_i32 = arith.constant 0 : i32
    %c0_i32_0 = arith.constant 0 : i32
    %c0_i32_1 = arith.constant 0 : i32
    return %c0_i32, %c0_i32_0 : i32, i32
  }
  func.func @transform_6(%arg0: i32) -> (i32, i32) {
    %c0_i32 = arith.constant 0 : i32
    %c0_i32_0 = arith.constant 0 : i32
    return %arg0, %c0_i32 : i32, i32
  }
}

module attributes {stable_mosaic.version = 11 : i64} {
  func.func @_reduce_kernel(%arg0: i32, %arg1: memref<16x16xbf16, #tpu.memory_space<vmem>>, %arg2: memref<16x6xf32, #tpu.memory_space<vmem>>, %arg3: memref<16x4xf32, #tpu.memory_space<vmem>>, %arg4: memref<5x3xf32, #tpu.memory_space<vmem>>, %arg5: memref<5x5xf32, #tpu.memory_space<vmem>>) attributes {dimension_semantics = [#tpu.dimension_semantics<arbitrary>], iteration_bounds = array<i64: 1>, scalar_prefetch = 0 : i64, scratch_operands = 0 : i64, tpu.core_type = #tpu.core_type<tc>, window_params = [{transform_indices = @transform_0, window_bounds = array<i64: 16, 16>}, {pipeline_mode = #tpu.pipeline_mode<synchronous>, transform_indices = @transform_1, window_bounds = array<i64: 16, 6>}, {pipeline_mode = #tpu.pipeline_mode<synchronous>, transform_indices = @transform_2, window_bounds = array<i64: 16, 4>}, {pipeline_mode = #tpu.pipeline_mode<synchronous>, transform_indices = @transform_3, window_bounds = array<i64: 5, 3>}, {pipeline_mode = #tpu.pipeline_mode<synchronous>, transform_indices = @transform_4, window_bounds = array<i64: 5, 5>}]} {
    %c0_i32 = arith.constant 0 : i32
    %0 = arith.cmpi eq, %arg0, %c0_i32 : i32
    %1 = arith.extui %0 : i1 to i32
    %c0_i32_0 = arith.constant 0 : i32
    %2 = arith.cmpi ne, %1, %c0_i32_0 : i32
    scf.if %2 {
      %cst_18 = arith.constant 0.000000e+00 : f32
      %32 = vector.broadcast %cst_18 : f32 to vector<5x3xf32>
      %c0_19 = arith.constant 0 : index
      %c0_20 = arith.constant 0 : index
      %33 = vector.load %arg4[%c0_19, %c0_20] : memref<5x3xf32, #tpu.memory_space<vmem>>, vector<5x3xf32>
      tpu.vector_store %arg4[%c0_19, %c0_20], %32 {strides = array<i32>} : memref<5x3xf32, #tpu.memory_space<vmem>>, vector<5x3xf32>,
      %cst_21 = arith.constant 0.000000e+00 : f32
      %34 = vector.broadcast %cst_21 : f32 to vector<5x5xf32>
      %c0_22 = arith.constant 0 : index
      %c0_23 = arith.constant 0 : index
      %35 = vector.load %arg5[%c0_22, %c0_23] : memref<5x5xf32, #tpu.memory_space<vmem>>, vector<5x5xf32>
      tpu.vector_store %arg5[%c0_22, %c0_23], %34 {strides = array<i32>} : memref<5x5xf32, #tpu.memory_space<vmem>>, vector<5x5xf32>,
    } else {
    }
    %c0 = arith.constant 0 : index
    %c0_1 = arith.constant 0 : index
    %3 = vector.load %arg1[%c0, %c0_1] : memref<16x16xbf16, #tpu.memory_space<vmem>>, vector<16x16xbf16>
    %c0_2 = arith.constant 0 : index
    %c0_3 = arith.constant 0 : index
    %4 = vector.load %arg2[%c0_2, %c0_3] : memref<16x6xf32, #tpu.memory_space<vmem>>, vector<16x6xf32>
    %5 = arith.truncf %4 : vector<16x6xf32> to vector<16x6xbf16>
    %c16_i32 = arith.constant 16 : i32
    %6 = arith.muli %arg0, %c16_i32 : i32
    %7 = tpu.assume_multiple %6, 16 : i32
    %8 = arith.index_cast %7 : i32 to index
    %c0_4 = arith.constant 0 : index
    %9 = vector.load %arg2[%8, %c0_4] : memref<16x6xf32, #tpu.memory_space<vmem>>, vector<16x6xf32>
    %10 = arith.index_cast %7 : i32 to index
    %c0_5 = arith.constant 0 : index
    %11 = vector.load %arg3[%10, %c0_5] : memref<16x4xf32, #tpu.memory_space<vmem>>, vector<16x4xf32>
    %12 = vector.extract_strided_slice %11 {offsets = [0, 0], sizes = [16, 3], strides = [1, 1]} : vector<16x4xf32> to vector<16x3xf32>
    %cst = arith.constant dense<0.000000e+00> : vector<16x6xf32>
    %13 = tpu.matmul %3, %5, %cst {dimension_numbers = #tpu.dot_dimension_numbers<[1], [0], [0], [1], [0, 0, 1, 1], [], []>} : vector<16x16xbf16>, vector<16x6xbf16>, vector<16x6xf32> -> vector<16x6xf32>
    %14 = arith.addf %13, %9 : vector<16x6xf32>
    %15 = vector.extract_strided_slice %14 {offsets = [0, 0], sizes = [16, 5], strides = [1, 1]} : vector<16x6xf32> to vector<16x5xf32>
    %16 = vector.extract_strided_slice %14 {offsets = [0, 5], sizes = [16, 1], strides = [1, 1]} : vector<16x6xf32> to vector<16x1xf32>
    %17 = tpu.reciprocal %16 {approx = true} : vector<16x1xf32> -> vector<16x1xf32>
    %18 = vector.extract_strided_slice %9 {offsets = [0, 0], sizes = [16, 5], strides = [1, 1]} : vector<16x6xf32> to vector<16x5xf32>
    %c0_6 = arith.constant 0 : index
    %c0_7 = arith.constant 0 : index
    %19 = vector.load %arg5[%c0_6, %c0_7] : memref<5x5xf32, #tpu.memory_space<vmem>>, vector<5x5xf32>
    %20 = vector.broadcast %17 : vector<16x1xf32> to vector<16x5xf32>
    %21 = arith.mulf %18, %20 : vector<16x5xf32>
    %cst_8 = arith.constant dense<0.000000e+00> : vector<5x5xf32>
    %22 = tpu.matmul %21, %15, %cst_8 {dimension_numbers = #tpu.dot_dimension_numbers<[0], [0], [1], [1], [0, 1, 1, 1], [], []>} : vector<16x5xf32>, vector<16x5xf32>, vector<5x5xf32> -> vector<5x5xf32>
    %23 = arith.addf %19, %22 : vector<5x5xf32>
    %c0_9 = arith.constant 0 : index
    %c0_10 = arith.constant 0 : index
    %24 = vector.load %arg5[%c0_9, %c0_10] : memref<5x5xf32, #tpu.memory_space<vmem>>, vector<5x5xf32>
    tpu.vector_store %arg5[%c0_9, %c0_10], %23 {strides = array<i32>} : memref<5x5xf32, #tpu.memory_space<vmem>>, vector<5x5xf32>,
    %c0_11 = arith.constant 0 : index
    %c0_12 = arith.constant 0 : index
    %25 = vector.load %arg4[%c0_11, %c0_12] : memref<5x3xf32, #tpu.memory_space<vmem>>, vector<5x3xf32>
    %cst_13 = arith.constant dense<0.000000e+00> : vector<5x3xf32>
    %26 = tpu.matmul %18, %12, %cst_13 {dimension_numbers = #tpu.dot_dimension_numbers<[0], [0], [1], [1], [0, 1, 1, 1], [], []>} : vector<16x5xf32>, vector<16x3xf32>, vector<5x3xf32> -> vector<5x3xf32>
    %27 = arith.addf %25, %26 : vector<5x3xf32>
    %c0_14 = arith.constant 0 : index
    %c0_15 = arith.constant 0 : index
    %28 = vector.load %arg4[%c0_14, %c0_15] : memref<5x3xf32, #tpu.memory_space<vmem>>, vector<5x3xf32>
    tpu.vector_store %arg4[%c0_14, %c0_15], %27 {strides = array<i32>} : memref<5x3xf32, #tpu.memory_space<vmem>>, vector<5x3xf32>,
    %c0_i32_16 = arith.constant 0 : i32
    %29 = arith.cmpi eq, %arg0, %c0_i32_16 : i32
    %30 = arith.extui %29 : i1 to i32
    %c0_i32_17 = arith.constant 0 : i32
    %31 = arith.cmpi ne, %30, %c0_i32_17 : i32
    scf.if %31 {
      %c0_18 = arith.constant 0 : index
      %c0_19 = arith.constant 0 : index
      %32 = vector.load %arg4[%c0_18, %c0_19] : memref<5x3xf32, #tpu.memory_space<vmem>>, vector<5x3xf32>
      %33 = vector.extract_strided_slice %32 {offsets = [0, 0], sizes = [5, 1], strides = [1, 1]} : vector<5x3xf32> to vector<5x1xf32>
      %34 = vector.extract_strided_slice %32 {offsets = [0, 1], sizes = [5, 2], strides = [1, 1]} : vector<5x3xf32> to vector<5x2xf32>
      %cst_20 = arith.constant 0.000000e+00 : f32
      %35 = vector.broadcast %cst_20 : f32 to vector<5x1xf32>
      %36 = arith.subf %35, %33 : vector<5x1xf32>
      %37 = arith.mulf %36, %33 : vector<5x1xf32>
      %38 = arith.mulf %34, %34 : vector<5x2xf32>
      %cst_21 = arith.constant dense<0.000000e+00> : vector<5xf32>
      %39 = vector.multi_reduction <add>, %38, %cst_21 [1] : vector<5x2xf32> to vector<5xf32>
      %40 = vector.shape_cast %39 : vector<5xf32> to vector<5x1xf32>
      %41 = arith.addf %37, %40 : vector<5x1xf32>
      %42 = math.absf %41 : vector<5x1xf32>
      %cst_22 = arith.constant 9.99999993E-9 : f32
      %43 = vector.broadcast %cst_22 : f32 to vector<5x1xf32>
      %44 = arith.maximumf %42, %43 : vector<5x1xf32>
      %45 = math.rsqrt %44 : vector<5x1xf32>
      %46 = vector.broadcast %45 : vector<5x1xf32> to vector<5x3xf32>
      %47 = arith.mulf %32, %46 : vector<5x3xf32>
      %c0_23 = arith.constant 0 : index
      %c0_24 = arith.constant 0 : index
      %48 = vector.load %arg4[%c0_23, %c0_24] : memref<5x3xf32, #tpu.memory_space<vmem>>, vector<5x3xf32>
      tpu.vector_store %arg4[%c0_23, %c0_24], %47 {strides = array<i32>} : memref<5x3xf32, #tpu.memory_space<vmem>>, vector<5x3xf32>,
    } else {
    }
    return
  }
  func.func @transform_0(%arg0: i32) -> (i32, i32) {
    %c0_i32 = arith.constant 0 : i32
    %c0_i32_0 = arith.constant 0 : i32
    return %arg0, %c0_i32 : i32, i32
  }
  func.func @transform_1(%arg0: i32) -> (i32, i32) {
    %c0_i32 = arith.constant 0 : i32
    %c0_i32_0 = arith.constant 0 : i32
    %c0_i32_1 = arith.constant 0 : i32
    return %c0_i32, %c0_i32_0 : i32, i32
  }
  func.func @transform_2(%arg0: i32) -> (i32, i32) {
    %c0_i32 = arith.constant 0 : i32
    %c0_i32_0 = arith.constant 0 : i32
    %c0_i32_1 = arith.constant 0 : i32
    return %c0_i32, %c0_i32_0 : i32, i32
  }
  func.func @transform_3(%arg0: i32) -> (i32, i32) {
    %c0_i32 = arith.constant 0 : i32
    %c0_i32_0 = arith.constant 0 : i32
    %c0_i32_1 = arith.constant 0 : i32
    return %c0_i32, %c0_i32_0 : i32, i32
  }
  func.func @transform_4(%arg0: i32) -> (i32, i32) {
    %c0_i32 = arith.constant 0 : i32
    %c0_i32_0 = arith.constant 0 : i32
    %c0_i32_1 = arith.constant 0 : i32
    return %c0_i32, %c0_i32_0 : i32, i32
  }
}

</mosaic_0001>

<bundles_post_ra>
// kernel: hyperse_forward.7
= control target key start
LH: loop header
LB: loop body
LE: loop exit
PB: predicated region body
PF: predicated region fallthrough
CT: control target
= control target key end

     0   :  { %s307_s6 = smov 0   ;;  %s346_s0 = inlined_call_operand.vmem [shape: f32[48,8], index: 0, kind: input, shape index: {}]   ;;  %s347_s1 = inlined_call_operand.vmem [shape: f32[48,10], index: 1, kind: output, shape index: {}]  }
   0x1 LB: > { %s250_s7 = sadd.s32 4294967295, %s293_s6   ;;  %p254_p0 = scmp.ge.s32.totalorder %s293_s6, 1  ;;  %s293_s6 = sphi %s307_s6, %s11_s6  }
   0x2   : > { %p88_p1 = scmp.lt.s32.totalorder %s293_s6, 4 }
   0x4   : > { %p89_p2 = pnand %p254_p0, %p88_p1 }
   0x5   : > { %s255_s8 = sshll.u32 (!%p89_p2), %s250_s7, 1  ;;  %vm124_vm0 = vcmask (!%p89_p2), 64512   ;;  %vm175_vm5 = vcmask (!%p89_p2), 7168   ;;  %s295_s16 = smov (!%p89_p2), 1   ;;  %vm188_vm8 = vcmask (!%p89_p2), 72712   ;;  %vm191_vm9 = vcmask (!%p89_p2), 80968  }
   0x6   : > { %92 = sbr.rel (%p89_p2) target bundleno = 331 (0x14b), region = 24  ;;  %p109_p3 = scmp.lt.s32.totalorder (!%p89_p2), %s255_s8, 5  ;;  %v296_v50 = vmov (!%p89_p2), 1.0  }
   0xd   : > { %s349_s8 = smov (!%p109_p3, %s255_s8), 5 }
   0xe   : > { %s256_s9 = sshll.u32 %s349_s8, 3 }
   0xf   : > { %s112_s12 = scalar_lea.vmem %s346_s0, %s256_s9  ;;  %s332_s15 = scalar_lea.vmem %s347_s1, %s256_s9 }
  0x10   : > { %v120_v0 = vld [vmem:[%s112_s12] sm:$0xff]  ;;  %v323_v1 = vld [vmem:[%s112_s12 + $0x8] sm:$0xff] }
  0x11   : > { %v122_v2 = vmul.f32 %v120_v0, %v120_v0  ;;  %v123_v3 = vmul.f32 %v323_v1, %v323_v1 }
  0x13   : > { %v125_v4 = vsel %vm124_vm0, %v122_v2, 0.0  ;;  %v128_v5 = vsel %vm124_vm0, %v123_v3, 0.0 }
  0x14   : > { %126 = vadd.xlane.f32.xlu0 %v125_v4 }
  0x18   : > { %129 = vadd.xlane.f32.xlu0 %v128_v5 }
  0xa1   : > { %v127_v6 = vpop.xlane.xlu0 %126 }
  0xa2   : > { %271 = vrsqrt.f32 %v127_v6  ;;  %vm133_vm1 = vcmp.eq.f32.partialorder %v127_v6, inf  ;;  %v136_v10 = vand.u32 2147483648, %v127_v6  ;;  %vm135_vm2 = vcmp.eq.f32.partialorder %v127_v6, 0.0 }
  0xa5   : > { %v130_v7 = vpop.xlane.xlu0 %129 }
  0xa6   : > { %273 = vrsqrt.f32 %v130_v7  ;;  %vm140_vm3 = vcmp.eq.f32.partialorder %v130_v7, inf  ;;  %v143_v16 = vand.u32 2147483648, %v130_v7  ;;  %vm142_vm4 = vcmp.eq.f32.partialorder %v130_v7, 0.0 }
  0xac   : > { %v272_v8 = vpop.eup %271 }
  0xad   : > { %v132_v9 = vmul.f32 %v272_v8, %v127_v6 }
  0xaf   : > { %v134_v11 = vsel %vm133_vm1, %v127_v6, %v132_v9 }
  0xb0   : > { %v274_v12 = vpop.eup %273  ;;  %v137_v13 = vsel %vm135_vm2, %v136_v10, %v134_v11 }
  0xb1   : > { %v139_v14 = vmul.f32 %v274_v12, %v130_v7  ;;  %v145_v15 = vmul.f32 1.442695, %v137_v13  ;;  %v167_v21 = vmax.f32 %v137_v13, 1e-30  ;;  %v161_v24 = vmul.f32 %v137_v13, %v137_v13 }
  0xb2   : > { %vm159_vm6 = vcmp.lt.f32.partialorder %v137_v13, 0.0001 }
  0xb3   : > { %v141_v17 = vsel %vm140_vm3, %v130_v7, %v139_v14  ;;  %275 = vpow2.f32 %v145_v15  ;;  %v163_v26 = vmul.f32 0.16666667, %v161_v24 }
  0xb4   : > { %v144_v18 = vsel %vm142_vm4, %v143_v16, %v141_v17 }
  0xb5   : > { %v147_v19 = vmul.f32 1.442695, %v144_v18  ;;  %v168_v23 = vmax.f32 %v144_v18, 1e-30  ;;  %v162_v28 = vmul.f32 %v144_v18, %v144_v18  ;;  %v165_v34 = vadd.f32 1.0, %v163_v26 }
  0xb6   : > { %vm160_vm7 = vcmp.lt.f32.partialorder %v144_v18, 0.0001 }
  0xb7   : > { %277 = vpow2.f32 %v147_v19  ;;  %v164_v37 = vmul.f32 0.16666667, %v162_v28 }
  0xb9   : > { %v166_v44 = vadd.f32 1.0, %v164_v37 }
  0xbd   : > { %v276_v20 = vpop.eup %275 }
  0xbe   : > { %279 = vrcp.f32 %v276_v20 }
  0xbf   : > { %281 = vrcp.f32 %v167_v21 }
  0xc1   : > { %v278_v22 = vpop.eup %277 }
  0xc2   : > { %283 = vrcp.f32 %v278_v22 }
  0xc3   : > { %285 = vrcp.f32 %v168_v23 }
  0xc8   : > { %v280_v25 = vpop.eup %279 }
  0xc9   : > { %v155_v27 = vsub.f32 %v276_v20, %v280_v25  ;;  %v151_v29 = vadd.f32 %v280_v25, %v276_v20  ;;  %v282_v30 = vpop.eup %281 }
  0xcb   : > { %v157_v31 = vmul.f32 0.5, %v155_v27  ;;  %v153_v32 = vmul.f32 0.5, %v151_v29 }
  0xcc   : > { %v284_v33 = vpop.eup %283 }
  0xcd   : > { %v170_v35 = vmul.f32 %v282_v30, %v157_v31  ;;  %v156_v36 = vsub.f32 %v278_v22, %v284_v33  ;;  %v152_v38 = vadd.f32 %v284_v33, %v278_v22  ;;  %176 = vst.msk [vmem:[%s332_s15] sm:$0xff] %vm175_vm5, %v153_v32  ;;  %v286_v42 = vpop.eup %285 }
  0xcf   : > { %v173_v39 = vsel %vm159_vm6, %v165_v34, %v170_v35  ;;  %v158_v40 = vmul.f32 0.5, %v156_v36  ;;  %v154_v41 = vmul.f32 0.5, %v152_v38 }
  0xd0   : > { %v178_v43 = vmul.f32 %v173_v39, %v120_v0 }
  0xd1   : > { %v172_v45 = vmul.f32 %v286_v42, %v158_v40  ;;  %177 = vst.msk [vmem:[%s332_s15 + $0x8] sm:$0xff] %vm175_vm5, %v154_v41 }
  0xd2   : > { %182 = vrot.lane.b32.xlu1 %v178_v43, %s295_s16 }
  0xd3   : > { %v174_v46 = vsel %vm160_vm7, %v166_v44, %v172_v45 }
  0xd4   : > { %v179_v47 = vmul.f32 %v174_v46, %v323_v1 }
  0xd6   : > { %184 = vrot.lane.b32.xlu1 %v179_v47, %s295_s16 }
 0x144   : > { %v183_v48 = vpop.permute.xlu1 %182 }
 0x145   : > { %189 = vst.msk [vmem:[%s332_s15] sm:$0xff] %vm188_vm8, %v183_v48 }
 0x146   : > { %192 = vst.msk [vmem:[%s332_s15] sm:$0xff] %vm191_vm9, %v296_v50 }
 0x148   : > { %v185_v49 = vpop.permute.xlu1 %184 }
 0x149   : > { %190 = vst.msk [vmem:[%s332_s15 + $0x8] sm:$0xff] %vm188_vm8, %v185_v49 }
 0x14a   : > { %193 = vst.msk [vmem:[%s332_s15 + $0x8] sm:$0xff] %vm191_vm9, %v296_v50 }
 0x14b PF: > { %s11_s6 = sadd.s32 1, %s293_s6  }
 0x14c   : > { %p8_p4 = scmp.ge.s32.totalorder %s11_s6, 5  }
 0x14e   :  { %10 = sbr.rel (!%p8_p4) target bundleno = 1 (0x1), region = 54 }

// kernel: hyperse_forward.8
= control target key start
LH: loop header
LB: loop body
LE: loop exit
PB: predicated region body
PF: predicated region fallthrough
CT: control target
= control target key end

     0   :  { %s590_s15 = smov 0   ;;  %s645_s0 = inlined_call_operand.vmem [shape: bf16[48,48], index: 0, kind: input, shape index: {}]   ;;  %s646_s1 = inlined_call_operand.vmem [shape: f32[48,10], index: 1, kind: input, shape index: {}]   ;;  %s647_s2 = inlined_call_operand.vmem [shape: f32[9,15], index: 2, kind: input, shape index: {}]   ;;  %s648_s3 = inlined_call_operand.vmem [shape: f32[1,15], index: 3, kind: input, shape index: {}]   ;;  %s649_s4 = inlined_call_operand.vmem [shape: f32[48,17], index: 4, kind: output, shape index: {}]  }
   0x1 LB: > { %s478_s16 = sadd.s32 4294967295, %s557_s15   ;;  %p482_p0 = scmp.ge.s32.totalorder %s557_s15, 1  ;;  %s557_s15 = sphi %s590_s15, %s14_s15  }
   0x2   : > { %p163_p1 = scmp.lt.s32.totalorder %s557_s15, 4 }
   0x4   : > { %p164_p2 = pnand %p482_p0, %p163_p1 }
   0x5   : > { %v204_v0 = vld [vmem:[%s646_s1] sm:$0xff] (!%p164_p2)  ;;  %v205_v1 = vld [vmem:[%s646_s1 + $0x8] sm:$0xff] (!%p164_p2)  ;;  %v206_v2 = vld [vmem:[%s646_s1 + $0x10] sm:$0xff] (!%p164_p2)  ;;  %s483_s23 = sshll.u32 (!%p164_p2), %s478_s16, 1  ;;  %v559_v3 = vmov (!%p164_p2), 0.0   ;;  %vm560_vm0 = vmmov (!%p164_p2), 0  }
   0x6   : > { %167 = sbr.rel (%p164_p2) target bundleno = 763 (0x2fb), region = 36  ;;  %504 = vmatprep.subr.bf16.mxu0 (!%p164_p2), %v559_v3  ;;  %v210_v4 = vpack.c.bf16 (!%p164_p2), %v205_v1, %v204_v0  ;;  %v207_v5 = vld [vmem:[%s646_s1 + $0x18] sm:$0xff] (!%p164_p2)  ;;  %510 = vmatprep.mubr.msk.bf16.mxu0 (!%p164_p2), %vm560_vm0, %v559_v3  ;;  %p190_p3 = scmp.lt.s32.totalorder (!%p164_p2), %s483_s23, 5  ;;  %v208_v7 = vld [vmem:[%s646_s1 + $0x20] sm:$0xff] (!%p164_p2)  ;;  %v209_v8 = vld [vmem:[%s646_s1 + $0x28] sm:$0xff] (!%p164_p2)  ;;  %vm222_vm1 = vcmask (!%p164_p2), 392192  }
   0x7   : > { %v211_v6 = vpack.c.bf16 (!%p164_p2), %v207_v5, %v206_v2  ;;  %v212_v9 = vpack.c.bf16 (!%p164_p2), %v209_v8, %v208_v7  ;;  %v561_v11 = vmov (!%p164_p2), 9   ;;  %s487_s8 = sshll.u32 (!%p164_p2), %s478_s16, 4  ;;  %v281_v21 = vld [vmem:[%s647_s2] sm:$0xff] (!%p164_p2)  ;;  %v282_v22 = vld [vmem:[%s647_s2 + $0x8] sm:$0x1] (!%p164_p2)  ;;  %vm297_vm2 = vcmask (!%p164_p2), 1040384  }
   0x8   : > { %505 = vmatpush3.bf16.msra.mxu0 (!%p164_p2), %v210_v4  ;;  %541 = vset.pattern.permute.xlu0 (!%p164_p2), %v561_v11  ;;  %s214_s11 = scalar_lea.vmem (!%p164_p2), %s646_s1, %s487_s8  ;;  %v521_v23 = vpack.c.bf16 (!%p164_p2), %v282_v22, %v281_v21  ;;  %vm562_vm3 = vmmov (!%p164_p2), 1   ;;  %vm290_vm5 = vcmask (!%p164_p2), 72704   ;;  %v490_v29 = vld [vmem:[%s648_s3] ss:$0 sm:$0xff] (!%p164_p2)  ;;  %vm380_vm6 = vcmask (!%p164_p2), 121856   ;;  %s563_s19 = smov (!%p164_p2), 1  }
   0x9   : > { %506 = vmatprep.subr.bf16.mxu0 (!%p164_p2), %v559_v3  ;;  %v215_v12 = vld [vmem:[%s214_s11] sm:$0xff] (!%p164_p2)  ;;  %v216_v14 = vld [vmem:[%s214_s11 + $0x8] sm:$0xff] (!%p164_p2)  ;;  %vm522_vm4 = vmpackc.low (!%p164_p2), %vm297_vm2, %vm562_vm3  ;;  %vm403_vm9 = vcmask (!%p164_p2), 7168   ;;  %vm414_vm12 = vcmask (!%p164_p2), 130056   ;;  %vm417_vm13 = vcmask (!%p164_p2), 138368   ;;  %v564_v56 = vmov (!%p164_p2), 1.0  }
   0xa   : > { %523 = vmatprep.subr.msk.bf16.mxu1 (!%p164_p2), %vm522_vm4, %v521_v23 }
   0xb   : > { %526 = vmatpush3.bf16.msk.msra.mxu1 (!%p164_p2), %vm522_vm4, %v521_v23 }
   0xc   : > { %507 = vmatpush3.bf16.msra.mxu0 (!%p164_p2), %v211_v6 }
   0xd   : > { %s651_s23 = smov (!%p190_p3, %s483_s23), 5  ;;  %508 = vmatprep.subr.bf16.mxu0 %v559_v3 }
   0xe   : > { %s484_s30 = sshll.u32 %s651_s23, 2  ;;  %s486_s20 = sshll.u32 %s651_s23, 3 }
   0xf   : > { %s193_s7 = scalar_lea.vmem %s645_s0, %s484_s30  ;;  %s199_s24 = scalar_lea.vmem %s649_s4, %s486_s20 }
  0x10   : > { %v542_v10 = vld [vmem:[%s193_s7] sm:$0xff]   ;;  %509 = vmatpush3.bf16.msra.mxu0 %v212_v9 }
  0x13   : > { %511 = vmatmul.mubr.msk.bf16.vlgmr.msra.gmra.mrb[0].mxu0 %vm222_vm1, %v542_v10 }
  0xe6   : > { %v260_v13 = vpop.f32.mrb[0].mxu0 }
  0xe7   : > { %v261_v15 = vadd.f32 %v260_v13, %v215_v12  ;;  %v512_v16 = vpop.f32.mrb[1].mxu0 }
  0xe8   : > { %v263_v17 = vpop.f32.mrb[2].mxu0 }
  0xe9   : > { %543 = vrcp.f32 %v261_v15  ;;  %v264_v18 = vadd.f32 %v263_v17, %v216_v14  ;;  %v513_v19 = vpop.f32.mrb[3].mxu0 }
  0xeb   : > { %545 = vrcp.f32 %v264_v18 }
  0xf3   : > { %v544_v20 = vpop.eup %543 }
  0xf4   : > { %271 = vperm.xlu0 %541, %v544_v20  }
  0xf5   : > { %v546_v24 = vpop.eup %545 }
  0xf8   : > { %276 = vperm.xlu0 %541, %v546_v24  }
 0x173   : > { %v272_v25 = vpop.permute.xlu0 %271 }
 0x174   : > { %v279_v26 = vmul.f32 %v272_v25, %v261_v15 }
 0x176   : > { %518 = vmatprep.mubr.msk.f32.mxu1 %vm290_vm5, %v279_v26 }
 0x177   : > { %v277_v27 = vpop.permute.xlu0 %276 }
 0x178   : > { %v280_v28 = vmul.f32 %v277_v27, %v264_v18 }
 0x17a   : > { %519 = vmatmul.mubr.msk.f32.vlgmr.msra.gmra.mrb[0].mxu1 %vm290_vm5, %v280_v28 }
 0x24d   : > { %v520_v30 = vpop.f32.mrb[0].mxu1 }
 0x24e   : > { %v373_v31 = vadd.f32 %v520_v30, %v490_v29  ;;  %v367_v32 = vpop.f32.mrb[1].mxu1 }
 0x24f   : > { %v368_v33 = vadd.f32 %v490_v29, %v367_v32 }
 0x250   : > { %v377_v34 = vmax.f32 %v373_v31, 0.0 }
 0x251   : > { %v376_v35 = vmax.f32 %v368_v33, 0.0 }
 0x252   : > { %v379_v36 = vmul.f32 %v377_v34, %v377_v34 }
 0x253   : > { %408 = vrot.lane.b32.xlu0 %v376_v35, %s563_s19  ;;  %v378_v38 = vmul.f32 %v376_v35, %v376_v35 }
 0x254   : > { %v384_v37 = vsel %vm380_vm6, %v379_v36, 0.0 }
 0x255   : > { %385 = vadd.xlane.f32.xlu1 %v384_v37  ;;  %v381_v39 = vsel %vm380_vm6, %v378_v38, 0.0 }
 0x259   : > { %382 = vadd.xlane.f32.xlu1 %v381_v39 }
 0x26a   : > { %410 = vrot.lane.b32.xlu1 %v377_v34, %s563_s19 }
 0x2c5   : > { %v409_v54 = vpop.permute.xlu0 %408 }
 0x2e2   : > { %v386_v40 = vpop.xlane.xlu1 %385 }
 0x2e3   : > { %v388_v41 = vadd.f32 1.0, %v386_v40 }
 0x2e5   : > { %547 = vrsqrt.f32 %v388_v41  ;;  %vm398_vm7 = vcmp.eq.f32.partialorder %v388_v41, inf  ;;  %v401_v50 = vand.u32 2147483648, %v388_v41  ;;  %vm400_vm11 = vcmp.eq.f32.partialorder %v388_v41, 0.0 }
 0x2e6   : > { %v383_v42 = vpop.xlane.xlu1 %382 }
 0x2e7   : > { %v387_v43 = vadd.f32 1.0, %v383_v42 }
 0x2e9   : > { %549 = vrsqrt.f32 %v387_v43  ;;  %vm391_vm8 = vcmp.eq.f32.partialorder %v387_v43, inf  ;;  %v394_v48 = vand.u32 2147483648, %v387_v43  ;;  %vm393_vm10 = vcmp.eq.f32.partialorder %v387_v43, 0.0 }
 0x2ea   : > { %v411_v55 = vpop.permute.xlu1 %410 }
 0x2ef   : > { %v548_v44 = vpop.eup %547 }
 0x2f0   : > { %v397_v45 = vmul.f32 %v548_v44, %v388_v41 }
 0x2f2   : > { %v399_v49 = vsel %vm398_vm7, %v388_v41, %v397_v45 }
 0x2f3   : > { %v550_v46 = vpop.eup %549  ;;  %v402_v53 = vsel %vm400_vm11, %v401_v50, %v399_v49 }
 0x2f4   : > { %v390_v47 = vmul.f32 %v550_v46, %v387_v43  ;;  %405 = vst.msk [vmem:[%s199_s24 + $0x8] sm:$0xff] %vm403_vm9, %v402_v53 }
 0x2f5   : > { %416 = vst.msk [vmem:[%s199_s24 + $0x8] sm:$0xff] %vm414_vm12, %v411_v55 }
 0x2f6   : > { %v392_v51 = vsel %vm391_vm8, %v387_v43, %v390_v47  ;;  %419 = vst.msk [vmem:[%s199_s24 + $0x8] sm:$0xff] %vm417_vm13, %v564_v56 }
 0x2f7   : > { %v395_v52 = vsel %vm393_vm10, %v394_v48, %v392_v51 }
 0x2f8   : > { %404 = vst.msk [vmem:[%s199_s24] sm:$0xff] %vm403_vm9, %v395_v52 }
 0x2f9   : > { %415 = vst.msk [vmem:[%s199_s24] sm:$0xff] %vm414_vm12, %v409_v54 }
 0x2fa   : > { %418 = vst.msk [vmem:[%s199_s24] sm:$0xff] %vm417_vm13, %v564_v56 }
 0x2fb PF: > { %s14_s15 = sadd.s32 1, %s557_s15  }
 0x2fc   : > { %p11_p4 = scmp.ge.s32.totalorder %s14_s15, 5  }
 0x2fe   :  { %13 = sbr.rel (!%p11_p4) target bundleno = 1 (0x1), region = 67 }

// kernel: hyperse_forward.9
= control target key start
LH: loop header
LB: loop body
LE: loop exit
PB: predicated region body
PF: predicated region fallthrough
CT: control target
= control target key end

     0   :  { %s701_s20 = smov 0   ;;  %s762_s0 = inlined_call_operand.vmem [shape: bf16[48,48], index: 0, kind: input, shape index: {}]   ;;  %s763_s1 = inlined_call_operand.vmem [shape: f32[48,17], index: 1, kind: input, shape index: {}]   ;;  %s764_s2 = inlined_call_operand.vmem [shape: f32[16,2], index: 2, kind: input, shape index: {}]   ;;  %s765_s3 = inlined_call_operand.vmem [shape: f32[1,2], index: 3, kind: input, shape index: {}]   ;;  %s766_s4 = inlined_call_operand.<no memory space> [shape: f32[1,1], index: 4, kind: input, shape index: {}]   ;;  %s767_s5 = inlined_call_operand.vmem [shape: f32[48,3], index: 5, kind: output, shape index: {}]  }
   0x1   :  { %v10_v0 = vstv %s766_s4 }
   0x2   :  { %11 = vst [vmem:[#allocation2] sm:$0x1] %v10_v0 }
   0x3 LB: > { %s568_s21 = sadd.s32 4294967295, %s661_s20   ;;  %p572_p0 = scmp.ge.s32.totalorder %s661_s20, 1  ;;  %s661_s20 = sphi %s701_s20, %s17_s20  }
   0x4   : > { %p190_p1 = scmp.lt.s32.totalorder %s661_s20, 4 }
   0x6   : > { %p191_p2 = pnand %p572_p0, %p190_p1 }
   0x7   : > { %v233_v1 = vld [vmem:[%s763_s1] sm:$0xff] (!%p191_p2)  ;;  %v234_v2 = vld [vmem:[%s763_s1 + $0x8] sm:$0xff] (!%p191_p2)  ;;  %v235_v3 = vld [vmem:[%s763_s1 + $0x10] sm:$0xff] (!%p191_p2)  ;;  %s573_s27 = sshll.u32 (!%p191_p2), %s568_s21, 1  ;;  %v663_v4 = vmov (!%p191_p2), 0.0   ;;  %vm664_vm0 = vmmov (!%p191_p2), 0   ;;  %v464_v0 = vlaneseq (!%p191_p2) }
   0x8   : > { %194 = sbr.rel (%p191_p2) target bundleno = 1231 (0x4cf), region = 40  ;;  %593 = vmatprep.subr.bf16.mxu0 (!%p191_p2), %v663_v4  ;;  %v239_v5 = vpack.c.bf16 (!%p191_p2), %v234_v2, %v233_v1  ;;  %v236_v6 = vld [vmem:[%s763_s1 + $0x18] sm:$0xff] (!%p191_p2)  ;;  %599 = vmatprep.mubr.msk.bf16.mxu0 (!%p191_p2), %vm664_vm0, %v663_v4  ;;  %p219_p3 = scmp.lt.s32.totalorder (!%p191_p2), %s573_s27, 5  ;;  %v237_v8 = vld [vmem:[%s763_s1 + $0x20] sm:$0xff] (!%p191_p2)  ;;  %v238_v9 = vld [vmem:[%s763_s1 + $0x28] sm:$0xff] (!%p191_p2)  ;;  %vm251_vm1 = vcmask (!%p191_p2), 392192  }
   0x9   : > { %v240_v7 = vpack.c.bf16 (!%p191_p2), %v236_v6, %v235_v3  ;;  %v241_v10 = vpack.c.bf16 (!%p191_p2), %v238_v9, %v237_v8  ;;  %v665_v12 = vmov (!%p191_p2), 16   ;;  %s577_s13 = sshll.u32 (!%p191_p2), %s568_s21, 4  ;;  %v310_v22 = vld [vmem:[%s764_s2] sm:$0xff] (!%p191_p2)  ;;  %v311_v23 = vld [vmem:[%s764_s2 + $0x8] sm:$0xff] (!%p191_p2)  ;;  %vm319_vm2 = vcmask (!%p191_p2), 130048   ;;  %s667_s28 = smov (!%p191_p2), 1  }
   0xa   : > { %594 = vmatpush3.bf16.msra.mxu0 (!%p191_p2), %v239_v5  ;;  %627 = vset.pattern.permute.xlu0 (!%p191_p2), %v665_v12  ;;  %s243_s16 = scalar_lea.vmem (!%p191_p2), %s763_s1, %s577_s13  ;;  %v610_v24 = vpack.c.bf16 (!%p191_p2), %v311_v23, %v310_v22  ;;  %v580_v30 = vld [vmem:[%s765_s3] ss:$0 sm:$0xff] (!%p191_p2)  ;;  %vm403_vm3 = vcmask (!%p191_p2), 15360   ;;  %v666_v39 = vmov (!%p191_p2), 0   ;;  %v465_v3 = vshrl.u32 (!%p191_p2), %v464_v0, 7 }
   0xb   : > { %595 = vmatprep.subr.bf16.mxu0 (!%p191_p2), %v663_v4  ;;  %v244_v13 = vld [vmem:[%s243_s16] sm:$0xff] (!%p191_p2)  ;;  %v245_v15 = vld [vmem:[%s243_s16 + $0x8] sm:$0xff] (!%p191_p2)  ;;  %628 = vset.pattern.permute.xlu1 (!%p191_p2), %v666_v39  ;;  %vm492_vm12 = vcmask (!%p191_p2), 7168   ;;  %vm507_vm13 = vcmask (!%p191_p2), 23560  }
   0xc   : > { %611 = vmatprep.subr.bf16.mxu1 (!%p191_p2), %v610_v24  ;;  %v456_v1 = vld [vmem:[#allocation2] sm:$0x1] (!%p191_p2)  ;;  %v466_v5 = vsub.s32 (!%p191_p2), 0, %v465_v3 }
   0xd   : > { %613 = vmatpush3.bf16.msra.mxu1 (!%p191_p2), %v610_v24  ;;  %v457_v2 = vmax.f32 (!%p191_p2), %v456_v1, 0.01 }
   0xe   : > { %596 = vmatpush3.bf16.msra.mxu0 (!%p191_p2), %v240_v7 }
   0xf   : > { %s769_s27 = smov (!%p219_p3, %s573_s27), 5  ;;  %597 = vmatprep.subr.bf16.mxu0 %v663_v4  ;;  %v458_v4 = vmin.f32 %v457_v2, 0.999 }
  0x10   : > { %s574_s9 = sshll.u32 %s769_s27, 2  ;;  %s576_s4 = sshll.u32 %s769_s27, 3 }
  0x11   : > { %s222_s12 = scalar_lea.vmem %s762_s0, %s574_s9  ;;  %v467_v6 = vrot.slane %v458_v4, %v466_v5  ;;  %s228_s26 = scalar_lea.vmem %s767_s5, %s576_s4 }
  0x12   : > { %v630_v11 = vld [vmem:[%s222_s12] sm:$0xff]   ;;  %598 = vmatpush3.bf16.msra.mxu0 %v241_v10 }
  0x15   : > { %600 = vmatmul.mubr.msk.bf16.vlgmr.msra.gmra.mrb[0].mxu0 %vm251_vm1, %v630_v11 }
  0xe8   : > { %v289_v14 = vpop.f32.mrb[0].mxu0 }
  0xe9   : > { %v290_v16 = vadd.f32 %v289_v14, %v244_v13  ;;  %v601_v17 = vpop.f32.mrb[1].mxu0 }
  0xea   : > { %v292_v18 = vpop.f32.mrb[2].mxu0 }
  0xeb   : > { %631 = vrcp.f32 %v290_v16  ;;  %v293_v19 = vadd.f32 %v292_v18, %v245_v15  ;;  %v602_v20 = vpop.f32.mrb[3].mxu0 }
  0xed   : > { %633 = vrcp.f32 %v293_v19 }
  0xf5   : > { %v632_v21 = vpop.eup %631 }
  0xf6   : > { %300 = vperm.xlu0 %627, %v632_v21  }
  0xf7   : > { %v634_v25 = vpop.eup %633 }
  0xfa   : > { %305 = vperm.xlu0 %627, %v634_v25  }
  0xfe   : > { %629 = vset.pattern.permute.xlu0 %v666_v39 }
 0x175   : > { %v301_v26 = vpop.permute.xlu0 %300 }
 0x176   : > { %v308_v27 = vmul.f32 %v301_v26, %v290_v16 }
 0x178   : > { %607 = vmatprep.mubr.msk.f32.mxu1 %vm319_vm2, %v308_v27 }
 0x179   : > { %v306_v28 = vpop.permute.xlu0 %305 }
 0x17a   : > { %v309_v29 = vmul.f32 %v306_v28, %v293_v19 }
 0x17c   : > { %608 = vmatmul.mubr.msk.f32.vlgmr.msra.gmra.mrb[0].mxu1 %vm319_vm2, %v309_v29 }
 0x24f   : > { %v609_v31 = vpop.f32.mrb[0].mxu1 }
 0x250   : > { %v392_v32 = vpop.f32.mrb[1].mxu1  ;;  %v398_v33 = vadd.f32 %v609_v31, %v580_v30 }
 0x251   : > { %v393_v34 = vadd.f32 %v580_v30, %v392_v32 }
 0x252   : > { %v402_v37 = vmul.f32 %v398_v33, %v398_v33 }
 0x253   : > { %v401_v35 = vmul.f32 %v393_v34, %v393_v34 }
 0x254   : > { %v407_v38 = vsel %vm403_vm3, %v402_v37, 0.0 }
 0x255   : > { %v404_v36 = vsel %vm403_vm3, %v401_v35, 0.0 }
 0x256   : > { %405 = vadd.xlane.f32.xlu1 %v404_v36 }
 0x25a   : > { %408 = vadd.xlane.f32.xlu1 %v407_v38 }
 0x2e3   : > { %v406_v40 = vpop.xlane.xlu1 %405 }
 0x2e4   : > { %v410_v41 = vadd.f32 1.0, %v406_v40 }
 0x2e6   : > { %635 = vrsqrt.f32 %v410_v41  ;;  %vm414_vm4 = vcmp.eq.f32.partialorder %v410_v41, inf  ;;  %v417_v46 = vand.u32 2147483648, %v410_v41  ;;  %vm416_vm5 = vcmp.eq.f32.partialorder %v410_v41, 0.0 }
 0x2e7   : > { %v409_v42 = vpop.xlane.xlu1 %408 }
 0x2e8   : > { %v411_v43 = vadd.f32 1.0, %v409_v42 }
 0x2ea   : > { %637 = vrsqrt.f32 %v411_v43  ;;  %vm421_vm6 = vcmp.eq.f32.partialorder %v411_v43, inf  ;;  %v424_v52 = vand.u32 2147483648, %v411_v43  ;;  %vm423_vm7 = vcmp.eq.f32.partialorder %v411_v43, 0.0 }
 0x2f0   : > { %v636_v44 = vpop.eup %635 }
 0x2f1   : > { %v413_v45 = vmul.f32 %v636_v44, %v410_v41 }
 0x2f3   : > { %v415_v47 = vsel %vm414_vm4, %v410_v41, %v413_v45 }
 0x2f4   : > { %v638_v48 = vpop.eup %637  ;;  %v418_v49 = vsel %vm416_vm5, %v417_v46, %v415_v47 }
 0x2f5   : > { %v420_v50 = vmul.f32 %v638_v48, %v411_v43  ;;  %v426_v51 = vadd.f32 1.0, %v418_v49 }
 0x2f7   : > { %639 = vrcp.f32 %v426_v51  ;;  %v422_v53 = vsel %vm421_vm6, %v411_v43, %v420_v50 }
 0x2f8   : > { %v425_v54 = vsel %vm423_vm7, %v424_v52, %v422_v53 }
 0x2f9   : > { %v427_v55 = vadd.f32 1.0, %v425_v54 }
 0x2fb   : > { %641 = vrcp.f32 %v427_v55 }
 0x301   : > { %v640_v56 = vpop.eup %639 }
 0x302   : > { %v429_v57 = vmul.f32 %v640_v56, %v393_v34 }
 0x304   : > { %v432_v58 = vmul.f32 %v429_v57, %v429_v57 }
 0x305   : > { %v642_v59 = vpop.eup %641 }
 0x306   : > { %v434_v60 = vsel %vm403_vm3, %v432_v58, 0.0  ;;  %v431_v61 = vmul.f32 %v642_v59, %v398_v33 }
 0x307   : > { %435 = vadd.xlane.f32.xlu0 %v434_v60 }
 0x308   : > { %v433_v62 = vmul.f32 %v431_v61, %v431_v61 }
 0x30a   : > { %v437_v63 = vsel %vm403_vm3, %v433_v62, 0.0 }
 0x30b   : > { %438 = vadd.xlane.f32.xlu1 %v437_v63 }
 0x31c   : > { %469 = vperm.xlu1 %628, %v467_v6  }
 0x394   : > { %v436_v7 = vpop.xlane.xlu0 %435 }
 0x395   : > { %643 = vrsqrt.f32 %v436_v7  ;;  %vm442_vm8 = vcmp.eq.f32.partialorder %v436_v7, inf  ;;  %v445_v11 = vand.u32 2147483648, %v436_v7  ;;  %vm444_vm9 = vcmp.eq.f32.partialorder %v436_v7, 0.0 }
 0x398   : > { %v439_v8 = vpop.xlane.xlu1 %438 }
 0x399   : > { %645 = vrsqrt.f32 %v439_v8  ;;  %vm449_vm10 = vcmp.eq.f32.partialorder %v439_v8, inf  ;;  %v452_v17 = vand.u32 2147483648, %v439_v8  ;;  %vm451_vm11 = vcmp.eq.f32.partialorder %v439_v8, 0.0 }
 0x39c   : > { %v470_v22 = vpop.permute.xlu1 %469 }
 0x39f   : > { %v644_v9 = vpop.eup %643 }
 0x3a0   : > { %v441_v10 = vmul.f32 %v644_v9, %v436_v7 }
 0x3a2   : > { %v443_v12 = vsel %vm442_vm8, %v436_v7, %v441_v10 }
 0x3a3   : > { %v646_v13 = vpop.eup %645  ;;  %v446_v14 = vsel %vm444_vm9, %v445_v11, %v443_v12 }
 0x3a4   : > { %v454_v15 = vmax.f32 %v446_v14, 1e-08  ;;  %v448_v16 = vmul.f32 %v646_v13, %v439_v8 }
 0x3a6   : > { %v450_v18 = vsel %vm449_vm10, %v439_v8, %v448_v16  ;;  %647 = vrcp.f32 %v454_v15 }
 0x3a7   : > { %v453_v19 = vsel %vm451_vm11, %v452_v17, %v450_v18 }
 0x3a8   : > { %v455_v20 = vmax.f32 %v453_v19, 1e-08 }
 0x3aa   : > { %649 = vrcp.f32 %v455_v20 }
 0x3b0   : > { %v648_v21 = vpop.eup %647 }
 0x3b1   : > { %v460_v23 = vmul.f32 %v648_v21, %v429_v57 }
 0x3b3   : > { %v472_v24 = vmul.f32 %v470_v22, %v460_v23 }
 0x3b4   : > { %v650_v25 = vpop.eup %649 }
 0x3b5   : > { %v462_v26 = vmul.f32 %v650_v25, %v431_v61  ;;  %v474_v27 = vmul.f32 %v472_v24, %v472_v24  ;;  %v495_v38 = vmul.f32 2.0, %v472_v24 }
 0x3b7   : > { %v473_v28 = vmul.f32 %v470_v22, %v462_v26  ;;  %v476_v29 = vsel %vm403_vm3, %v474_v27, 0.0 }
 0x3b8   : > { %477 = vadd.xlane.f32.xlu1 %v476_v29 }
 0x3b9   : > { %v475_v30 = vmul.f32 %v473_v28, %v473_v28  ;;  %v496_v43 = vmul.f32 2.0, %v473_v28 }
 0x3bb   : > { %v479_v31 = vsel %vm403_vm3, %v475_v30, 0.0 }
 0x3bc   : > { %480 = vadd.xlane.f32.xlu0 %v479_v31 }
 0x445   : > { %v478_v32 = vpop.xlane.xlu1 %477 }
 0x446   : > { %v482_v33 = vsub.f32 1.0, %v478_v32  ;;  %v486_v39 = vadd.f32 1.0, %v478_v32 }
 0x448   : > { %v484_v34 = vmax.f32 %v482_v33, 1e-08 }
 0x449   : > { %v481_v35 = vpop.xlane.xlu0 %480 }
 0x44a   : > { %651 = vrcp.f32 %v484_v34  ;;  %v483_v36 = vsub.f32 1.0, %v481_v35  ;;  %v487_v44 = vadd.f32 1.0, %v481_v35 }
 0x44c   : > { %v485_v37 = vmax.f32 %v483_v36, 1e-08 }
 0x44e   : > { %653 = vrcp.f32 %v485_v37 }
 0x454   : > { %v652_v40 = vpop.eup %651 }
 0x455   : > { %v489_v41 = vmul.f32 %v652_v40, %v486_v39  ;;  %v497_v42 = vmul.f32 %v652_v40, %v495_v38 }
 0x457   : > { %493 = vst.msk [vmem:[%s228_s26] sm:$0xff] %vm492_vm12, %v489_v41  ;;  %501 = vrot.lane.b32.xlu0 %v497_v42, %s667_s28 }
 0x458   : > { %v654_v45 = vpop.eup %653 }
 0x459   : > { %v491_v46 = vmul.f32 %v654_v45, %v487_v44  ;;  %v498_v47 = vmul.f32 %v654_v45, %v496_v43 }
 0x45b   : > { %494 = vst.msk [vmem:[%s228_s26 + $0x8] sm:$0xff] %vm492_vm12, %v491_v46  ;;  %503 = vrot.lane.b32.xlu0 %v498_v47, %s667_s28 }
 0x4c9   : > { %v502_v48 = vpop.permute.xlu0 %501 }
 0x4ca   : > { %508 = vst.msk [vmem:[%s228_s26] sm:$0xff] %vm507_vm13, %v502_v48 }
 0x4cd   : > { %v504_v49 = vpop.permute.xlu0 %503 }
 0x4ce   : > { %509 = vst.msk [vmem:[%s228_s26 + $0x8] sm:$0xff] %vm507_vm13, %v504_v49 }
 0x4cf PF: > { %s17_s20 = sadd.s32 1, %s661_s20  }
 0x4d0   : > { %p14_p4 = scmp.ge.s32.totalorder %s17_s20, 5  }
 0x4d2   :  { %16 = sbr.rel (!%p14_p4) target bundleno = 3 (0x3), region = 71 }

// kernel: hyperse_forward.11
= control target key start
LH: loop header
LB: loop body
LE: loop exit
PB: predicated region body
PF: predicated region fallthrough
CT: control target
= control target key end

     0   :  { %s729_s15 = smov 0   ;;  %s831_s0 = inlined_call_operand.vmem [shape: bf16[48,48], index: 0, kind: input, shape index: {}]   ;;  %s832_s1 = inlined_call_operand.vmem [shape: f32[48,17], index: 1, kind: input, shape index: {}]   ;;  %s833_s2 = inlined_call_operand.vmem [shape: f32[48,4], index: 2, kind: input, shape index: {}]   ;;  %s834_s3 = inlined_call_operand.vmem [shape: f32[16,3], index: 3, kind: output, shape index: {0}]   ;;  %s835_s4 = inlined_call_operand.vmem [shape: f32[16,16], index: 4, kind: output, shape index: {1}]  }
   0x1 LB: > { %s735_s16 = sadd.s32 4294967295, %s696_s15   ;;  %p606_p0 = scmp.ge.s32.totalorder %s696_s15, 1  ;;  %s696_s15 = sphi %s729_s15, %s15_s15  }
   0x2   : > { %p156_p1 = scmp.lt.s32.totalorder %s696_s15, 4 }
   0x4   : > { %p157_p2 = pnand %p606_p0, %p156_p1 }
   0x5   : > { %s607_s17 = sshll.u32 (!%p157_p2), %s735_s16, 1  ;;  %p609_p4 = scmp.ne.s32.totalorder (!%p157_p2), %s735_s16, 0 }
   0x6   : > { %160 = sbr.rel (%p157_p2) target bundleno = 1161 (0x489), region = 32  ;;  %p178_p3 = scmp.lt.s32.totalorder (!%p157_p2), %s607_s17, 5 }
   0xd   : > { %s837_s17 = smov (!%p178_p3, %s607_s17), 5  ;;  %187 = sbr.rel (%p609_p4) target bundleno = 20 (0x14), region = 36 }
   0xe   : > { %s608_s18 = sshll.u32 %s837_s17, 2  ;;  %vm188_vm0 = vcmask (!%p609_p4), 23552   ;;  %vm191_vm1 = vcmask (!%p609_p4), 130048   ;;  %v698_v0 = vmov (!%p609_p4), 0.0  }
   0xf   : > { %s181_s21 = scalar_lea.vmem %s831_s0, %s608_s18  ;;  %189 = vst.msk [vmem:[%s834_s3] sm:$0xff] (!%p609_p4), %vm188_vm0, %v698_v0  ;;  %190 = vst.msk [vmem:[%s834_s3 + $0x8] sm:$0xff] (!%p609_p4), %vm188_vm0, %v698_v0 }
  0x10   : > { %192 = vst.msk [vmem:[%s835_s4] sm:$0xff] (!%p609_p4), %vm191_vm1, %v698_v0  ;;  %193 = vst.msk [vmem:[%s835_s4 + $0x8] sm:$0xff] (!%p609_p4), %vm191_vm1, %v698_v0 }
  0x14 PF: > { %v196_v1 = vld [vmem:[%s832_s1] sm:$0xff]  ;;  %v197_v2 = vld [vmem:[%s832_s1 + $0x8] sm:$0xff]  ;;  %v198_v3 = vld [vmem:[%s832_s1 + $0x10] sm:$0xff]  ;;  %v699_v4 = vmov 0.0   ;;  %vm700_vm2 = vmmov 0   ;;  %vm217_vm3 = vcmask 392192  }
  0x15   : > { %632 = vmatprep.subr.bf16.mxu0 %v699_v4  ;;  %v202_v5 = vpack.c.bf16 %v197_v2, %v196_v1  ;;  %v199_v6 = vld [vmem:[%s832_s1 + $0x18] sm:$0xff]  ;;  %638 = vmatprep.mubr.msk.bf16.mxu0 %vm700_vm2, %v699_v4  ;;  %v200_v8 = vld [vmem:[%s832_s1 + $0x20] sm:$0xff]  ;;  %v201_v9 = vld [vmem:[%s832_s1 + $0x28] sm:$0xff]  ;;  %v701_v12 = vmov 16   ;;  %s610_s18 = sshll.u32 %s735_s16, 4  ;;  %vm310_vm4 = vcmask 130048  }
  0x16   : > { %v203_v7 = vpack.c.bf16 %v199_v6, %v198_v3  ;;  %v204_v10 = vpack.c.bf16 %v201_v9, %v200_v8  ;;  %v679_v11 = vld [vmem:[%s181_s21] sm:$0xff]   ;;  %678 = vset.pattern.permute.xlu0 %v701_v12  ;;  %s206_s22 = scalar_lea.vmem %s832_s1, %s610_s18  ;;  %s209_s24 = scalar_lea.vmem %s833_s2, %s610_s18  ;;  %v397_v41 = vld [vmem:[%s834_s3 + $0x8] sm:$0xff]  ;;  %vm513_vm5 = vcmask 23552  }
  0x17   : > { %633 = vmatpush3.bf16.msra.mxu0 %v202_v5  ;;  %v207_v13 = vld [vmem:[%s206_s22] sm:$0xff]  ;;  %v208_v15 = vld [vmem:[%s206_s22 + $0x8] sm:$0xff]  ;;  %p617_p5 = scmp.ne.s32.totalorder %s735_s16, 2 }
  0x18   : > { %634 = vmatprep.subr.bf16.mxu0 %v699_v4  ;;  %v210_v27 = vld [vmem:[%s209_s24] sm:$0xff]  ;;  %v211_v28 = vld [vmem:[%s209_s24 + $0x8] sm:$0xff]  ;;  %s702_s22 = smov (!%p617_p5), 127   ;;  %vm536_vm6 = vcmask (!%p617_p5), 15360   ;;  %v703_v55 = vmov (!%p617_p5), 0  }
  0x19   : > { %v660_v30 = vpack.c.bf16 %v211_v28, %v210_v27  ;;  %v265_v35 = vld [vmem:[%s835_s4 + $0x8] sm:$0xff]  ;;  %v264_v36 = vld [vmem:[%s835_s4] sm:$0xff] }
  0x1a   : > { %v396_v42 = vld [vmem:[%s834_s3] sm:$0xff] }
  0x1b   : > { %635 = vmatpush3.bf16.msra.mxu0 %v203_v7 }
  0x1c   : > { %636 = vmatprep.subr.bf16.mxu0 %v699_v4 }
  0x1f   : > { %637 = vmatpush3.bf16.msra.mxu0 %v204_v10 }
  0x22   : > { %639 = vmatmul.mubr.msk.bf16.vlgmr.msra.gmra.mrb[0].mxu0 %vm217_vm3, %v679_v11 }
  0xf5   : > { %v255_v14 = vpop.f32.mrb[0].mxu0 }
  0xf6   : > { %v256_v16 = vadd.f32 %v255_v14, %v207_v13  ;;  %v640_v17 = vpop.f32.mrb[1].mxu0 }
  0xf7   : > { %v258_v18 = vpop.f32.mrb[2].mxu0 }
  0xf8   : > { %680 = vrcp.f32 %v256_v16  ;;  %v259_v19 = vadd.f32 %v258_v18, %v208_v15  ;;  %v641_v20 = vpop.f32.mrb[3].mxu0 }
  0xfa   : > { %v656_v21 = vpack.c.bf16 %v259_v19, %v256_v16  ;;  %682 = vrcp.f32 %v259_v19 }
  0xfc   : > { %657 = vmatprep.subr.bf16.mxu1 %v656_v21 }
  0xfd   : > { %659 = vmatpush3.bf16.msra.mxu1 %v656_v21 }
  0xfe   : > { %661 = vmatprep.subr.bf16.mxu1 %v660_v30 }
 0x102   : > { %v681_v22 = vpop.eup %680 }
 0x103   : > { %268 = vperm.xlu0 %678, %v681_v22  }
 0x104   : > { %v683_v23 = vpop.eup %682 }
 0x107   : > { %273 = vperm.xlu0 %678, %v683_v23  }
 0x125   : > { %398 = vxpose.xlu0.b32.start [1/2] (short) (narrow) %v207_v13, 16 }
 0x129   : > { %399 = vxpose.xlu0.b32.end [2/2] (short) (narrow) %v208_v15, 16 }
 0x152   : > { %684 = vset.pattern.permute.xlu0 (!%p617_p5), %v703_v55 }
 0x182   : > { %v269_v24 = vpop.permute.xlu0 %268 }
 0x183   : > { %v276_v25 = vmul.f32 %v269_v24, %v207_v13 }
 0x185   : > { %278 = vxpose.xlu1.b32.start [1/2] (short) (narrow) %v276_v25, 16 }
 0x186   : > { %v274_v26 = vpop.permute.xlu0 %273 }
 0x187   : > { %v277_v29 = vmul.f32 %v274_v26, %v208_v15 }
 0x189   : > { %279 = vxpose.xlu1.b32.end [2/2] (short) (narrow) %v277_v29, 16 }
 0x1a5   : > { %v414_v32 = vpop.trf.xlu0 }
 0x1a7   : > { %685 = vset.pattern.permute.xlu1 (!%p617_p5), %v703_v55 }
 0x1a9   : > { %v415_v34 = vpop.trf.xlu0 }
 0x205   : > { %v294_v31 = vpop.trf.xlu1 }
 0x206   : > { %646 = vmatprep.mubr.msk.f32.mxu1 %vm310_vm4, %v294_v31 }
 0x209   : > { %v295_v33 = vpop.trf.xlu1 }
 0x20a   : > { %647 = vmatmul.mubr.msk.f32.vlgmr.msra.gmra.mrb[0].mxu1 %vm310_vm4, %v295_v33 }
 0x20b   : > { %663 = vmatpush3.bf16.msra.mxu1 %v660_v30  ;;  %653 = vmatprep.mubr.msk.f32.mxu1 %vm310_vm4, %v414_v32 }
 0x20e   : > { %654 = vmatmul.mubr.msk.f32.vlgmr.msra.gmra.mrb[2].mxu1 %vm310_vm4, %v415_v34 }
 0x2dd   : > { %v648_v37 = vpop.f32.mrb[0].mxu1 }
 0x2de   : > { %v393_v38 = vadd.f32 %v648_v37, %v265_v35  ;;  %v383_v39 = vpop.f32.mrb[1].mxu1 }
 0x2df   : > { %v392_v40 = vadd.f32 %v383_v39, %v264_v36  ;;  %519 = sbr.rel (%p617_p5) target bundleno = 1161 (0x489), region = 40 }
 0x2e0   : > { %395 = vst.msk [vmem:[%s835_s4 + $0x8] sm:$0xff] %vm310_vm4, %v393_v38 }
 0x2e1   : > { %394 = vst.msk [vmem:[%s835_s4] sm:$0xff] %vm310_vm4, %v392_v40  ;;  %v655_v43 = vpop.f32.mrb[2].mxu1 }
 0x2e2   : > { %v512_v44 = vadd.f32 %v655_v43, %v397_v41  ;;  %v502_v45 = vpop.f32.mrb[3].mxu1 }
 0x2e3   : > { %v511_v46 = vadd.f32 %v502_v45, %v396_v42 }
 0x2e4   : > { %515 = vst.msk [vmem:[%s834_s3 + $0x8] sm:$0xff] %vm513_vm5, %v512_v44 }
 0x2e5   : > { %514 = vst.msk [vmem:[%s834_s3] sm:$0xff] %vm513_vm5, %v511_v46 }
 0x2eb   : > { %v521_v48 = vld [vmem:[%s834_s3 + $0x8] sm:$0xff] }
 0x2ec   : > { %v520_v47 = vld [vmem:[%s834_s3] sm:$0xff]  ;;  %v527_v50 = vmul.f32 %v521_v48, %v521_v48  ;;  %v523_v58 = vsub.f32 0.0, %v521_v48 }
 0x2ed   : > { %v526_v49 = vmul.f32 %v520_v47, %v520_v47  ;;  %v522_v56 = vsub.f32 0.0, %v520_v47 }
 0x2ee   : > { %v525_v61 = vmul.f32 %v523_v58, %v521_v48 }
 0x2ef   : > { %530 = vrot.lane.b32.xlu0 %v526_v49, %s702_s22  ;;  %v524_v57 = vmul.f32 %v522_v56, %v520_v47 }
 0x2f3   : > { %532 = vrot.lane.b32.xlu0 %v527_v50, %s702_s22 }
 0x361   : > { %v531_v51 = vpop.permute.xlu0 %530 }
 0x362   : > { %v537_v52 = vsel %vm536_vm6, %v531_v51, 0.0 }
 0x363   : > { %538 = vadd.xlane.f32.xlu1 %v537_v52 }
 0x365   : > { %v533_v53 = vpop.permute.xlu0 %532 }
 0x366   : > { %v540_v54 = vsel %vm536_vm6, %v533_v53, 0.0 }
 0x367   : > { %541 = vadd.xlane.f32.xlu1 %v540_v54 }
 0x3f0   : > { %v539_v59 = vpop.xlane.xlu1 %538 }
 0x3f1   : > { %v543_v60 = vadd.f32 %v539_v59, %v524_v57 }
 0x3f3   : > { %v545_v62 = vand.u32 2147483647, %v543_v60 }
 0x3f4   : > { %v542_v63 = vpop.xlane.xlu1 %541 }
 0x3f5   : > { %v547_v0 = vmax.f32 %v545_v62, 1e-08  ;;  %v544_v1 = vadd.f32 %v542_v63, %v525_v61 }
 0x3f7   : > { %686 = vrsqrt.f32 %v547_v0  ;;  %v546_v2 = vand.u32 2147483647, %v544_v1 }
 0x3f9   : > { %v548_v3 = vmax.f32 %v546_v2, 1e-08 }
 0x3fb   : > { %688 = vrsqrt.f32 %v548_v3 }
 0x401   : > { %v687_v4 = vpop.eup %686 }
 0x402   : > { %553 = vperm.xlu0 %684, %v687_v4  }
 0x405   : > { %v689_v5 = vpop.eup %688 }
 0x406   : > { %558 = vperm.xlu1 %685, %v689_v5  }
 0x481   : > { %v554_v6 = vpop.permute.xlu0 %553 }
 0x482   : > { %v561_v7 = vmul.f32 %v554_v6, %v520_v47 }
 0x484   : > { %563 = vst.msk [vmem:[%s834_s3] sm:$0xff] %vm513_vm5, %v561_v7 }
 0x485   : > { %v559_v8 = vpop.permute.xlu1 %558 }
 0x486   : > { %v562_v9 = vmul.f32 %v559_v8, %v521_v48 }
 0x488   : > { %564 = vst.msk [vmem:[%s834_s3 + $0x8] sm:$0xff] %vm513_vm5, %v562_v9 }
 0x489 PF: > { %s15_s15 = sadd.s32 1, %s696_s15  }
 0x48a   : > { %p12_p6 = scmp.ge.s32.totalorder %s15_s15, 5  }
 0x48c   :  { %14 = sbr.rel (!%p12_p6) target bundleno = 1 (0x1), region = 76 }

// kernel: hyperse_forward.10
= control target key start
LH: loop header
LB: loop body
LE: loop exit
PB: predicated region body
PF: predicated region fallthrough
CT: control target
= control target key end

     0   :  { %s869_s24 = smov 0   ;;  %s957_s0 = inlined_call_operand.vmem [shape: bf16[48,48], index: 0, kind: input, shape index: {}]   ;;  %s958_s1 = inlined_call_operand.vmem [shape: f32[48,4], index: 1, kind: input, shape index: {}]   ;;  %s959_s2 = inlined_call_operand.vmem [shape: f32[3,16], index: 2, kind: input, shape index: {}]   ;;  %s960_s3 = inlined_call_operand.vmem [shape: f32[1,16], index: 3, kind: input, shape index: {}]   ;;  %s961_s4 = inlined_call_operand.vmem [shape: f32[16,16], index: 4, kind: input, shape index: {}]   ;;  %s962_s5 = inlined_call_operand.vmem [shape: f32[1,16], index: 5, kind: input, shape index: {}]   ;;  %s963_s6 = inlined_call_operand.vmem [shape: f32[48,16], index: 6, kind: output, shape index: {0}]   ;;  %s964_s7 = inlined_call_operand.vmem [shape: f32[48,16], index: 7, kind: output, shape index: {1}]  }
   0x1 LB: > { %s731_s25 = sadd.s32 4294967295, %s824_s24   ;;  %p735_p0 = scmp.ge.s32.totalorder %s824_s24, 1  ;;  %s824_s24 = sphi %s869_s24, %s18_s24  }
   0x2   : > { %p241_p1 = scmp.lt.s32.totalorder %s824_s24, 4 }
   0x4   : > { %p242_p2 = pnand %p735_p0, %p241_p1 }
   0x5   : > { %v299_v0 = vld [vmem:[%s958_s1] sm:$0xff] (!%p242_p2)  ;;  %v300_v1 = vld [vmem:[%s958_s1 + $0x8] sm:$0xff] (!%p242_p2)  ;;  %v301_v2 = vld [vmem:[%s958_s1 + $0x10] sm:$0xff] (!%p242_p2)  ;;  %s736_s9 = sshll.u32 (!%p242_p2), %s731_s25, 1  ;;  %v826_v3 = vmov (!%p242_p2), 0.0   ;;  %vm827_vm0 = vmmov (!%p242_p2), 0  }
   0x6   : > { %245 = sbr.rel (%p242_p2) target bundleno = 1574 (0x626), region = 44  ;;  %767 = vmatprep.subr.bf16.mxu0 (!%p242_p2), %v826_v3  ;;  %v305_v4 = vpack.c.bf16 (!%p242_p2), %v300_v1, %v299_v0  ;;  %v302_v5 = vld [vmem:[%s958_s1 + $0x18] sm:$0xff] (!%p242_p2)  ;;  %773 = vmatprep.mubr.msk.bf16.mxu0 (!%p242_p2), %vm827_vm0, %v826_v3  ;;  %p279_p3 = scmp.lt.s32.totalorder (!%p242_p2), %s736_s9, 5  ;;  %v303_v7 = vld [vmem:[%s958_s1 + $0x20] sm:$0xff] (!%p242_p2)  ;;  %v304_v8 = vld [vmem:[%s958_s1 + $0x28] sm:$0xff] (!%p242_p2)  ;;  %vm317_vm1 = vcmask (!%p242_p2), 392192   ;;  %v595_v0 = vlaneseq (!%p242_p2) }
   0x7   : > { %v306_v6 = vpack.c.bf16 (!%p242_p2), %v302_v5, %v301_v2  ;;  %v307_v9 = vpack.c.bf16 (!%p242_p2), %v304_v8, %v303_v7  ;;  %v828_v11 = vmov (!%p242_p2), 3   ;;  %s742_s20 = sshll.u32 (!%p242_p2), %s731_s25, 4  ;;  %v376_v22 = vld [vmem:[%s959_s2] sm:$0x7] (!%p242_p2)  ;;  %vm391_vm2 = vcmask (!%p242_p2), 1042432   ;;  %v473_v28 = vld [vmem:[%s961_s4 + $0x8] sm:$0xff] (!%p242_p2) }
   0x8   : > { %768 = vmatpush3.bf16.msra.mxu0 (!%p242_p2), %v305_v4  ;;  %804 = vset.pattern.permute.xlu0 (!%p242_p2), %v828_v11  ;;  %s309_s23 = scalar_lea.vmem (!%p242_p2), %s958_s1, %s742_s20  ;;  %vm384_vm3 = vcmask (!%p242_p2), 23552   ;;  %v472_v27 = vld [vmem:[%s961_s4] sm:$0xff] (!%p242_p2)  ;;  %vm481_vm4 = vcmask (!%p242_p2), 130048   ;;  %v596_v1 = vand.u32 (!%p242_p2), 127, %v595_v0 }
   0x9   : > { %769 = vmatprep.subr.bf16.mxu0 (!%p242_p2), %v826_v3  ;;  %v310_v12 = vld [vmem:[%s309_s23] sm:$0xff] (!%p242_p2)  ;;  %v311_v14 = vld [vmem:[%s309_s23 + $0x8] sm:$0xff] (!%p242_p2)  ;;  %777 = vmatprep.subr.msk.mxu1 (!%p242_p2), %vm391_vm2, %v376_v22  ;;  %v789_v29 = vpack.c.bf16 (!%p242_p2), %v473_v28, %v472_v27 }
   0xa   : > { %778 = vmatpush3.msk.msra.mxu1 (!%p242_p2), %vm391_vm2, %v376_v22  ;;  %v745_v30 = vld [vmem:[%s960_s3] ss:$0 sm:$0xff] (!%p242_p2) }
   0xb   : > { %790 = vmatprep.subr.bf16.mxu1 (!%p242_p2), %v789_v29  ;;  %v749_v37 = vld [vmem:[%s962_s5] ss:$0 sm:$0xff] (!%p242_p2) }
   0xc   : > { %770 = vmatpush3.bf16.msra.mxu0 (!%p242_p2), %v306_v6 }
   0xd   : > { %s966_s9 = smov (!%p279_p3, %s736_s9), 5  ;;  %771 = vmatprep.subr.bf16.mxu0 %v826_v3 }
   0xe   : > { %s737_s16 = sshll.u32 %s966_s9, 2  ;;  %s739_s13 = sshll.u32 %s966_s9, 3 }
   0xf   : > { %s282_s19 = scalar_lea.vmem %s957_s0, %s737_s16  ;;  %s288_s16 = scalar_lea.vmem %s963_s6, %s739_s13 }
  0x10   : > { %v805_v10 = vld [vmem:[%s282_s19] sm:$0xff]   ;;  %772 = vmatpush3.bf16.msra.mxu0 %v307_v9  ;;  %s294_s19 = scalar_lea.vmem %s964_s7, %s739_s13 }
  0x13   : > { %774 = vmatmul.mubr.msk.bf16.vlgmr.msra.gmra.mrb[0].mxu0 %vm317_vm1, %v805_v10 }
  0xe6   : > { %v355_v13 = vpop.f32.mrb[0].mxu0 }
  0xe7   : > { %v356_v15 = vadd.f32 %v355_v13, %v310_v12  ;;  %v775_v16 = vpop.f32.mrb[1].mxu0 }
  0xe8   : > { %v358_v17 = vpop.f32.mrb[2].mxu0 }
  0xe9   : > { %806 = vrcp.f32 %v356_v15  ;;  %v359_v18 = vadd.f32 %v358_v17, %v311_v14  ;;  %v776_v19 = vpop.f32.mrb[3].mxu0 }
  0xeb   : > { %808 = vrcp.f32 %v359_v18 }
  0xf3   : > { %v807_v20 = vpop.eup %806 }
  0xf4   : > { %366 = vperm.xlu0 %804, %v807_v20  }
  0xf5   : > { %v809_v21 = vpop.eup %808 }
  0xf8   : > { %371 = vperm.xlu0 %804, %v809_v21  }
 0x173   : > { %v367_v23 = vpop.permute.xlu0 %366 }
 0x174   : > { %v374_v24 = vmul.f32 %v367_v23, %v356_v15 }
 0x176   : > { %779 = vmatprep.mubr.msk.f32.mxu1 %vm384_vm3, %v374_v24 }
 0x177   : > { %v372_v25 = vpop.permute.xlu0 %371 }
 0x178   : > { %v375_v26 = vmul.f32 %v372_v25, %v359_v18 }
 0x17a   : > { %780 = vmatmul.mubr.msk.f32.vlgmr.msra.gmra.mrb[0].mxu1 %vm384_vm3, %v375_v26 }
 0x17b   : > { %792 = vmatpush3.bf16.msra.mxu1 %v789_v29 }
 0x24d   : > { %v781_v31 = vpop.f32.mrb[0].mxu1 }
 0x24e   : > { %v467_v32 = vadd.f32 %v781_v31, %v745_v30  ;;  %v461_v33 = vpop.f32.mrb[1].mxu1 }
 0x24f   : > { %v462_v34 = vadd.f32 %v745_v30, %v461_v33 }
 0x250   : > { %v471_v36 = vmax.f32 %v467_v32, 0.0 }
 0x251   : > { %v470_v35 = vmax.f32 %v462_v34, 0.0 }
 0x253   : > { %786 = vmatprep.mubr.msk.f32.mxu1 %vm481_vm4, %v470_v35 }
 0x254   : > { %787 = vmatmul.mubr.msk.f32.vlgmr.msra.gmra.mrb[2].mxu1 %vm481_vm4, %v471_v36 }
 0x327   : > { %v788_v38 = vpop.f32.mrb[2].mxu1 }
 0x328   : > { %v554_v39 = vpop.f32.mrb[3].mxu1  ;;  %v560_v40 = vadd.f32 %v788_v38, %v749_v37 }
 0x329   : > { %v555_v41 = vadd.f32 %v749_v37, %v554_v39 }
 0x32a   : > { %v564_v43 = vmul.f32 5.0, %v560_v40 }
 0x32b   : > { %v563_v42 = vmul.f32 5.0, %v555_v41 }
 0x32c   : > { %v568_v45 = vsel %vm481_vm4, %v564_v43, -inf }
 0x32d   : > { %v565_v44 = vsel %vm481_vm4, %v563_v42, -inf }
 0x32e   : > { %566 = vmax.xlane.f32.xlu1 %v565_v44 }
 0x332   : > { %569 = vmax.xlane.f32.xlu1 %v568_v45 }
 0x3bb   : > { %v567_v46 = vpop.xlane.xlu1 %566 }
 0x3bc   : > { %v571_v47 = vsub.f32 %v563_v42, %v567_v46 }
 0x3be   : > { %v573_v48 = vmul.f32 1.442695, %v571_v47 }
 0x3bf   : > { %v570_v49 = vpop.xlane.xlu1 %569 }
 0x3c0   : > { %810 = vpow2.f32 %v573_v48  ;;  %v572_v50 = vsub.f32 %v564_v43, %v570_v49 }
 0x3c2   : > { %v575_v51 = vmul.f32 1.442695, %v572_v50 }
 0x3c4   : > { %812 = vpow2.f32 %v575_v51 }
 0x3ca   : > { %v811_v52 = vpop.eup %810 }
 0x3cb   : > { %v577_v53 = vsel %vm481_vm4, %v811_v52, 0.0 }
 0x3cc   : > { %578 = vadd.xlane.f32.xlu0 %v577_v53 }
 0x3ce   : > { %v813_v54 = vpop.eup %812 }
 0x3cf   : > { %v580_v55 = vsel %vm481_vm4, %v813_v54, 0.0 }
 0x3d0   : > { %581 = vadd.xlane.f32.xlu1 %v580_v55 }
 0x459   : > { %v579_v56 = vpop.xlane.xlu0 %578 }
 0x45a   : > { %814 = vrcp.f32 %v579_v56 }
 0x45d   : > { %v582_v57 = vpop.xlane.xlu1 %581 }
 0x45e   : > { %816 = vrcp.f32 %v582_v57 }
 0x464   : > { %v815_v58 = vpop.eup %814 }
 0x465   : > { %v585_v59 = vmul.f32 %v815_v58, %v811_v52 }
 0x467   : > { %587 = vst.msk [vmem:[%s288_s16] sm:$0xff] %vm481_vm4, %v585_v59  ;;  %v589_v60 = vsel %vm481_vm4, %v585_v59, -inf }
 0x468   : > { %v817_v61 = vpop.eup %816  ;;  %590 = vmax.xlane.f32.xlu1 %v589_v60 }
 0x469   : > { %v586_v62 = vmul.f32 %v817_v61, %v813_v54 }
 0x46b   : > { %v592_v63 = vsel %vm481_vm4, %v586_v62, -inf  ;;  %588 = vst.msk [vmem:[%s288_s16 + $0x8] sm:$0xff] %vm481_vm4, %v586_v62 }
 0x46c   : > { %593 = vmax.xlane.f32.xlu1 %v592_v63 }
 0x4f5   : > { %v591_v2 = vpop.xlane.xlu1 %590 }
 0x4f6   : > { %vm597_vm5 = vcmp.eq.f32.partialorder %v585_v59, %v591_v2 }
 0x4f7   : > { %v599_v4 = vsel %vm597_vm5, %v596_v1, 16 }
 0x4f8   : > { %v601_v5 = vsel %vm481_vm4, %v599_v4, 2147483647 }
 0x4f9   : > { %v594_v6 = vpop.xlane.xlu1 %593  ;;  %v603_v7 = vshra.s32 %v601_v5, 16  ;;  %v602_v13 = vand.u32 65535, %v601_v5 }
 0x4fa   : > { %vm598_vm6 = vcmp.eq.f32.partialorder %v586_v62, %v594_v6 }
 0x4fb   : > { %v600_v8 = vsel %vm598_vm6, %v596_v1, 16  ;;  %v605_v9 = vcvt.s32.f32 %v603_v7  ;;  %v604_v15 = vcvt.s32.f32 %v602_v13 }
 0x4fc   : > { %v616_v10 = vsel %vm481_vm4, %v600_v8, 2147483647 }
 0x4fd   : > { %606 = vmin.xlane.f32.xlu1 %v605_v9  ;;  %v618_v11 = vshra.s32 %v616_v10, 16  ;;  %v617_v16 = vand.u32 65535, %v616_v10 }
 0x4ff   : > { %v620_v12 = vcvt.s32.f32 %v618_v11  ;;  %v619_v19 = vcvt.s32.f32 %v617_v16 }
 0x501   : > { %621 = vmin.xlane.f32.xlu1 %v620_v12 }
 0x58a   : > { %v607_v14 = vpop.xlane.xlu1 %606 }
 0x58b   : > { %vm608_vm7 = vcmp.eq.f32.partialorder %v605_v9, %v607_v14  ;;  %v613_v21 = vcvt.f32.s32 %v607_v14 }
 0x58c   : > { %v609_v17 = vsel %vm608_vm7, %v604_v15, inf }
 0x58d   : > { %610 = vmin.xlane.f32.xlu1 %v609_v17  ;;  %v614_v23 = vshll.u32 %v613_v21, 16 }
 0x58e   : > { %v622_v18 = vpop.xlane.xlu1 %621 }
 0x58f   : > { %vm623_vm8 = vcmp.eq.f32.partialorder %v620_v12, %v622_v18  ;;  %v628_v24 = vcvt.f32.s32 %v622_v18 }
 0x590   : > { %v624_v20 = vsel %vm623_vm8, %v619_v19, inf }
 0x591   : > { %625 = vmin.xlane.f32.xlu1 %v624_v20  ;;  %v629_v28 = vshll.u32 %v628_v24, 16 }
 0x61a   : > { %v611_v22 = vpop.xlane.xlu1 %610 }
 0x61b   : > { %v612_v25 = vcvt.f32.s32 %v611_v22 }
 0x61d   : > { %v615_v26 = vadd.s32 %v614_v23, %v612_v25 }
 0x61e   : > { %v626_v27 = vpop.xlane.xlu1 %625 }
 0x61f   : > { %vm631_vm9 = vcmp.eq.s32.totalorder %v596_v1, %v615_v26  ;;  %v627_v29 = vcvt.f32.s32 %v626_v27 }
 0x620   : > { %v752_v30 = vsel %vm631_vm9, 1.0, %v826_v3 }
 0x621   : > { %637 = vst.msk [vmem:[%s294_s19] sm:$0xff] %vm481_vm4, %v752_v30  ;;  %v630_v31 = vadd.s32 %v629_v28, %v627_v29 }
 0x623   : > { %vm632_vm10 = vcmp.eq.s32.totalorder %v596_v1, %v630_v31 }
 0x624   : > { %v753_v32 = vsel %vm632_vm10, 1.0, %v826_v3 }
 0x625   : > { %638 = vst.msk [vmem:[%s294_s19 + $0x8] sm:$0xff] %vm481_vm4, %v753_v32 }
 0x626 PF: > { %s18_s24 = sadd.s32 1, %s824_s24  }
 0x627   : > { %p15_p4 = scmp.ge.s32.totalorder %s18_s24, 5  }
 0x629   :  { %17 = sbr.rel (!%p15_p4) target bundleno = 1 (0x1), region = 87 }

// kernel: hyperse_forward.12
= control target key start
LH: loop header
LB: loop body
LE: loop exit
PB: predicated region body
PF: predicated region fallthrough
CT: control target
= control target key end

     0   :  { %v371_v0 = vmov 0.0   ;;  %vm372_vm0 = vmmov 0   ;;  %vm38_vm1 = vcmask 130048   ;;  %v373_v5 = vmov 3   ;;  %s448_s1 = inlined_call_operand.vmem [shape: f32[16,4], index: 1, kind: input, shape index: {}]   ;;  %s449_s0 = inlined_call_operand.vmem [shape: bf16[16,16], index: 0, kind: input, shape index: {}]   ;;  %s450_s2 = inlined_call_operand.vmem [shape: f32[3,16], index: 2, kind: input, shape index: {}]   ;;  %s451_s4 = inlined_call_operand.vmem [shape: f32[16,5], index: 4, kind: input, shape index: {}]   ;;  %s452_s3 = inlined_call_operand.vmem [shape: f32[1,16], index: 3, kind: input, shape index: {}]   ;;  %s453_s5 = inlined_call_operand.vmem [shape: f32[1,5], index: 5, kind: input, shape index: {}]   ;;  %s454_s6 = inlined_call_operand.vmem [shape: f32[16,5], index: 6, kind: output, shape index: {}]  }
   0x1   :  { %332 = vmatprep.subr.bf16.mxu0 %v371_v0  ;;  %v26_v1 = vld [vmem:[%s448_s1] sm:$0xff]  ;;  %v27_v2 = vld [vmem:[%s448_s1 + $0x8] sm:$0xff]  ;;  %334 = vmatprep.mubr.msk.bf16.mxu0 %vm372_vm0, %v371_v0  ;;  %vm112_vm2 = vcmask 1042432   ;;  %vm105_vm3 = vcmask 23552   ;;  %vm285_vm4 = vcmask 39936  }
   0x2   :  { %v28_v3 = vpack.c.bf16 %v27_v2, %v26_v1  ;;  %v358_v4 = vld [vmem:[%s449_s0] sm:$0xff]   ;;  %357 = vset.pattern.permute.xlu0 %v373_v5  ;;  %v194_v20 = vld [vmem:[%s451_s4 + $0x8] sm:$0xff] }
   0x3   :  { %v97_v14 = vld [vmem:[%s450_s2] sm:$0x7] }
   0x4   :  { %333 = vmatpush3.bf16.msra.mxu0 %v28_v3  ;;  %338 = vmatprep.subr.msk.mxu1 %vm112_vm2, %v97_v14  ;;  %v193_v19 = vld [vmem:[%s451_s4] sm:$0xff] }
   0x5   :  { %339 = vmatpush3.msk.msra.mxu1 %vm112_vm2, %v97_v14  ;;  %v350_v21 = vpack.c.bf16 %v194_v20, %v193_v19  ;;  %v316_v22 = vld [vmem:[%s452_s3] ss:$0 sm:$0xff] }
   0x6   :  { %v320_v29 = vld [vmem:[%s453_s5] ss:$0 sm:$0xff] }
   0x7   :  { %335 = vmatmul.mubr.msk.bf16.vlgmr.msra.gmra.mrb[0].mxu0 %vm38_vm1, %v358_v4  ;;  %351 = vmatprep.subr.bf16.mxu1 %v350_v21 }
  0xda   :  { %v76_v6 = vpop.f32.mrb[0].mxu0 }
  0xdb   :  { %v77_v7 = vadd.f32 %v76_v6, %v26_v1  ;;  %v336_v8 = vpop.f32.mrb[1].mxu0 }
  0xdc   :  { %v79_v9 = vpop.f32.mrb[2].mxu0 }
  0xdd   :  { %359 = vrcp.f32 %v77_v7  ;;  %v80_v10 = vadd.f32 %v79_v9, %v27_v2  ;;  %v337_v11 = vpop.f32.mrb[3].mxu0 }
  0xdf   :  { %361 = vrcp.f32 %v80_v10 }
  0xe7   :  { %v360_v12 = vpop.eup %359 }
  0xe8   :  { %87 = vperm.xlu0 %357, %v360_v12  }
  0xe9   :  { %v362_v13 = vpop.eup %361 }
  0xec   :  { %92 = vperm.xlu0 %357, %v362_v13  }
 0x167   :  { %v88_v15 = vpop.permute.xlu0 %87 }
 0x168   :  { %v95_v16 = vmul.f32 %v88_v15, %v77_v7 }
 0x16a   :  { %340 = vmatprep.mubr.msk.f32.mxu1 %vm105_vm3, %v95_v16 }
 0x16b   :  { %v93_v17 = vpop.permute.xlu0 %92 }
 0x16c   :  { %v96_v18 = vmul.f32 %v93_v17, %v80_v10 }
 0x16e   :  { %341 = vmatmul.mubr.msk.f32.vlgmr.msra.gmra.mrb[0].mxu1 %vm105_vm3, %v96_v18 }
 0x16f   :  { %353 = vmatpush3.bf16.msra.mxu1 %v350_v21 }
 0x241   :  { %v342_v23 = vpop.f32.mrb[0].mxu1 }
 0x242   :  { %v188_v24 = vadd.f32 %v342_v23, %v316_v22  ;;  %v182_v25 = vpop.f32.mrb[1].mxu1 }
 0x243   :  { %v183_v26 = vadd.f32 %v316_v22, %v182_v25 }
 0x244   :  { %v192_v28 = vmax.f32 %v188_v24, 0.0 }
 0x245   :  { %v191_v27 = vmax.f32 %v183_v26, 0.0 }
 0x247   :  { %347 = vmatprep.mubr.msk.f32.mxu1 %vm38_vm1, %v191_v27 }
 0x248   :  { %348 = vmatmul.mubr.msk.f32.vlgmr.msra.gmra.mrb[2].mxu1 %vm38_vm1, %v192_v28 }
 0x31b   :  { %v349_v30 = vpop.f32.mrb[2].mxu1 }
 0x31c   :  { %v274_v31 = vpop.f32.mrb[3].mxu1  ;;  %v280_v32 = vadd.f32 %v349_v30, %v320_v29 }
 0x31d   :  { %v275_v33 = vadd.f32 %v320_v29, %v274_v31 }
 0x31e   :  { %v284_v35 = vmul.f32 5.0, %v280_v32 }
 0x31f   :  { %v283_v34 = vmul.f32 5.0, %v275_v33 }
 0x320   :  { %v289_v37 = vsel %vm285_vm4, %v284_v35, -inf }
 0x321   :  { %v286_v36 = vsel %vm285_vm4, %v283_v34, -inf }
 0x322   :  { %287 = vmax.xlane.f32.xlu1 %v286_v36 }
 0x326   :  { %290 = vmax.xlane.f32.xlu1 %v289_v37 }
 0x3af   :  { %v288_v38 = vpop.xlane.xlu1 %287 }
 0x3b0   :  { %v292_v39 = vsub.f32 %v283_v34, %v288_v38 }
 0x3b2   :  { %v294_v40 = vmul.f32 1.442695, %v292_v39 }
 0x3b3   :  { %v291_v41 = vpop.xlane.xlu1 %290 }
 0x3b4   :  { %363 = vpow2.f32 %v294_v40  ;;  %v293_v42 = vsub.f32 %v284_v35, %v291_v41 }
 0x3b6   :  { %v296_v43 = vmul.f32 1.442695, %v293_v42 }
 0x3b8   :  { %365 = vpow2.f32 %v296_v43 }
 0x3be   :  { %v364_v44 = vpop.eup %363 }
 0x3bf   :  { %v298_v45 = vsel %vm285_vm4, %v364_v44, 0.0 }
 0x3c0   :  { %299 = vadd.xlane.f32.xlu0 %v298_v45 }
 0x3c2   :  { %v366_v46 = vpop.eup %365 }
 0x3c3   :  { %v301_v47 = vsel %vm285_vm4, %v366_v46, 0.0 }
 0x3c4   :  { %302 = vadd.xlane.f32.xlu1 %v301_v47 }
 0x44d   :  { %v300_v48 = vpop.xlane.xlu0 %299 }
 0x44e   :  { %367 = vrcp.f32 %v300_v48 }
 0x451   :  { %v303_v49 = vpop.xlane.xlu1 %302 }
 0x452   :  { %369 = vrcp.f32 %v303_v49 }
 0x458   :  { %v368_v50 = vpop.eup %367 }
 0x459   :  { %v306_v51 = vmul.f32 %v368_v50, %v364_v44 }
 0x45b   :  { %308 = vst.msk [vmem:[%s454_s6] sm:$0xff] %vm285_vm4, %v306_v51 }
 0x45c   :  { %v370_v52 = vpop.eup %369 }
 0x45d   :  { %v307_v53 = vmul.f32 %v370_v52, %v366_v46 }
 0x45f   :  { %309 = vst.msk [vmem:[%s454_s6 + $0x8] sm:$0xff] %vm285_vm4, %v307_v53 }

// kernel: hyperse_forward.13
= control target key start
LH: loop header
LB: loop body
LE: loop exit
PB: predicated region body
PF: predicated region fallthrough
CT: control target
= control target key end

     0   :  { %v442_v2 = vmov 0.0   ;;  %vm443_vm0 = vmmov 0   ;;  %s527_s0 = inlined_call_operand.vmem [shape: bf16[16,16], index: 0, kind: input, shape index: {}]   ;;  %s528_s1 = inlined_call_operand.vmem [shape: f32[16,6], index: 1, kind: input, shape index: {}]   ;;  %s529_s2 = inlined_call_operand.vmem [shape: f32[16,4], index: 2, kind: input, shape index: {}]   ;;  %s530_s3 = inlined_call_operand.vmem [shape: f32[5,3], index: 3, kind: output, shape index: {0}]   ;;  %s531_s4 = inlined_call_operand.hbm [shape: f32[5,5], index: 4, kind: output, shape index: {1}]  }
   0x1   :  { %v28_v0 = vld [vmem:[%s528_s1] sm:$0xff]  ;;  %v29_v1 = vld [vmem:[%s528_s1 + $0x8] sm:$0xff]  ;;  %376 = vmatprep.subr.bf16.mxu0 %v442_v2  ;;  %378 = vmatprep.mubr.msk.bf16.mxu0 %vm443_vm0, %v442_v2 }
   0x2   :  { %v30_v3 = vpack.c.bf16 %v29_v1, %v28_v0 }
   0x3   :  { %10 = vsyncpa [#allocation3], 0  ;;  %v411_v4 = vld [vmem:[%s527_s0] sm:$0xff]   ;;  %386 = vmatprep.mubr.msk.f32.mxu1 %vm443_vm0, %v442_v2  ;;  %vm43_vm1 = vcmask 130048   ;;  %v444_v5 = vmov 0.0|0.0   ;;  %v445_v6 = vmov 5  }
   0x4   :  { %377 = vmatpush3.bf16.msra.mxu0 %v30_v3  ;;  %396 = vmatprep.subr.bf16.mxu1 %v444_v5  ;;  %vm24_vm2 = vcmask 36864   ;;  %v36_v20 = vld [vmem:[%s529_s2] sm:$0xff]  ;;  %v37_v21 = vld [vmem:[%s529_s2 + $0x8] sm:$0xff]  ;;  %vm22_vm3 = vcmask 20480   ;;  %s446_s30 = smov 127   ;;  %vm331_vm4 = vcmask 12288  }
   0x5   :  { %409 = vset.pattern.permute.xlu0 %v445_v6  ;;  %25 = vst.msk [vmem:[#allocation2] sm:$0x1f] %vm24_vm2, %v442_v2  ;;  %v400_v22 = vpack.c.bf16 %v37_v21, %v36_v20  ;;  %v447_v37 = vmov 0   ;;  %s448_s5 = smov [#allocation2]  }
   0x6   :  { %23 = vst.msk [vmem:[%s530_s3] sm:$0x1f] %vm22_vm3, %v442_v2  ;;  %s354_s6 = sshll.u32 %s448_s5, 4  ;;  %s355_s6 = int_to_ptr.vmem [resolvable:$true] %s354_s6 }
   0x7   :  { %379 = vmatmul.mubr.msk.bf16.vlgmr.msra.gmra.mrb[0].mxu0 %vm43_vm1, %v411_v4  ;;  %s418_s7 = scalar_lea.vmem %s355_s6, 128  ;;  %p423_p1 = scmp.lt.s32.totalorder %s355_s6, %s355_s6 }
   0x8   :  { %p419_p0 = scmp.ne.s32.totalorder %s355_s6, %s418_s7  ;;  %p424_p2 = scmp.lt.s32.totalorder %s418_s7, %s418_s7 }
   0xa   :  { %p425_p3 = por %p424_p2, %p423_p1 }
   0xc   :  { %v90_v25 = vld [vmem:[#allocation2] sm:$0x1f]  ;;  %p426_p4 = pnand %p425_p3, %p419_p0 }
   0xd   :  { %v211_v29 = vld [vmem:[%s530_s3] sm:$0x1f] }
  0xda   :  { %v81_v7 = vpop.f32.mrb[0].mxu0 }
  0xdb   :  { %v82_v8 = vadd.f32 %v81_v7, %v28_v0  ;;  %v380_v9 = vpop.f32.mrb[1].mxu0 }
  0xdc   :  { %v84_v10 = vpop.f32.mrb[2].mxu0 }
  0xdd   :  { %412 = vrcp.f32 %v82_v8  ;;  %v85_v11 = vadd.f32 %v84_v10, %v29_v1  ;;  %v381_v12 = vpop.f32.mrb[3].mxu0 }
  0xdf   :  { %v397_v13 = vpack.c.bf16 %v85_v11, %v82_v8  ;;  %414 = vrcp.f32 %v85_v11 }
  0xe1   :  { %398 = vmatpush3.bf16.msra.mxu1 %v397_v13 }
  0xe2   :  { %399 = vmatprep.subr.bf16.mxu1 %v444_v5 }
  0xe7   :  { %v413_v14 = vpop.eup %412 }
  0xe8   :  { %93 = vperm.xlu0 %409, %v413_v14  }
  0xe9   :  { %v415_v15 = vpop.eup %414 }
  0xec   :  { %98 = vperm.xlu0 %409, %v415_v15  }
 0x10a   :  { %212 = vxpose.xlu0.b32.start [1/2] (short) (narrow) %v28_v0, 8 }
 0x10e   :  { %213 = vxpose.xlu0.b32.end [2/2] (short) (narrow) %v29_v1, 8 }
 0x137   :  { %410 = vset.pattern.permute.xlu0 %v447_v37 }
 0x167   :  { %v94_v16 = vpop.permute.xlu0 %93 }
 0x168   :  { %v101_v17 = vmul.f32 %v94_v16, %v28_v0 }
 0x16a   :  { %103 = vxpose.xlu1.b32.start [1/2] (short) (narrow) %v101_v17, 8 }
 0x16b   :  { %v99_v18 = vpop.permute.xlu0 %98 }
 0x16c   :  { %v102_v19 = vmul.f32 %v99_v18, %v29_v1 }
 0x16e   :  { %104 = vxpose.xlu1.b32.end [2/2] (short) (narrow) %v102_v19, 8 }
 0x18a   :  { %v228_v24 = vpop.trf.xlu0 }
 0x1ea   :  { %v119_v23 = vpop.trf.xlu1 }
 0x1eb   :  { %387 = vmatmul.mubr.msk.f32.vlgmr.msra.gmra.mrb[0].mxu1 %vm43_vm1, %v119_v23 }
 0x1ec   :  { %401 = vmatpush3.bf16.msra.mxu1 %v400_v22  ;;  %393 = vmatprep.mubr.msk.f32.mxu1 %vm443_vm0, %v442_v2 }
 0x1ef   :  { %394 = vmatmul.mubr.msk.f32.vlgmr.msra.gmra.mrb[2].mxu1 %vm43_vm1, %v228_v24 }
 0x2be   :  { %v204_v26 = vpop.f32.mrb[0].mxu1 }
 0x2bf   :  { %v208_v27 = vadd.f32 %v204_v26, %v90_v25  ;;  %v388_v28 = vpop.f32.mrb[1].mxu1 }
 0x2c1   :  { %210 = vst.msk [vmem:[#allocation2] sm:$0x1f] %vm24_vm2, %v208_v27 }
 0x2c2   :  { %v313_v30 = vpop.f32.mrb[2].mxu1 }
 0x2c3   :  { %v317_v31 = vadd.f32 %v313_v30, %v211_v29  ;;  %v395_v32 = vpop.f32.mrb[3].mxu1 }
 0x2c5   :  { %319 = vst.msk [vmem:[%s530_s3] sm:$0x1f] %vm22_vm3, %v317_v31 }
 0x2cc   :  { %v323_v33 = vld [vmem:[%s530_s3] sm:$0x1f] }
 0x2cd   :  { %v326_v34 = vmul.f32 %v323_v33, %v323_v33  ;;  %v324_v38 = vsub.f32 0.0, %v323_v33 }
 0x2cf   :  { %328 = vrot.lane.b32.xlu1 %v326_v34, %s446_s30  ;;  %v325_v39 = vmul.f32 %v324_v38, %v323_v33 }
 0x341   :  { %v329_v35 = vpop.permute.xlu1 %328 }
 0x342   :  { %v332_v36 = vsel %vm331_vm4, %v329_v35, 0.0 }
 0x343   :  { %333 = vadd.xlane.f32.xlu1 %v332_v36 }
 0x3d0   :  { %v334_v40 = vpop.xlane.xlu1 %333 }
 0x3d1   :  { %v335_v41 = vadd.f32 %v334_v40, %v325_v39 }
 0x3d3   :  { %v336_v42 = vand.u32 2147483647, %v335_v41 }
 0x3d5   :  { %v337_v43 = vmax.f32 %v336_v42, 1e-08 }
 0x3d7   :  { %416 = vrsqrt.f32 %v337_v43 }
 0x3e1   :  { %v417_v44 = vpop.eup %416 }
 0x3e2   :  { %341 = vperm.xlu0 %410, %v417_v44  }
 0x3e3   :  { %429 = shalt.err (!%p426_p4)
}
 0x3e4   :  { %s430_s10 = scalar_lea.hbm %s531_s4, 128 }
 0x3e5   :  { %p431_p5 = scmp.ne.s32.totalorder %s531_s4, %s430_s10  ;;  %p434_p6 = scmp.lt.u32.totalorder %s430_s10, %s531_s4 }
 0x3e7   :  { %p436_p7 = pnand %p434_p6, %p431_p5 }
 0x3e9   :  { %439 = shalt.err (!%p436_p7)
}
 0x3ea   :  { %357 = dma.vmem_to_hbm [thread:$0]  %s355_s6, 128, %s531_s4, [#allocation3]  }
 0x461   :  { %v342_v45 = vpop.permute.xlu0 %341 }
 0x462   :  { %v344_v46 = vmul.f32 %v342_v45, %v323_v33 }
 0x464   :  { %345 = vst.msk [vmem:[%s530_s3] sm:$0x1f] %vm22_vm3, %v344_v46 }
 0x465   :  { %440 = dma.done.wait [#allocation3], 128  }
 0x466   :  { %441 = vsyncadd [#allocation3], 4294967168 }
 0x467   :  { %363 = vsyncpa [#allocation3], 1 }

</bundles_post_ra>
